<compile_context>
chip_gen: v7x
topology: tpu7x:2x2x1
jax: 0.10.0
libtpu: 0.0.40
codegen_flags: <defaults>
</compile_context>

<pallas_src>
import functools

import jax
import jax.numpy as jnp
from jax.experimental import pallas as pl
from jax.experimental.pallas import tpu as pltpu


def _round_up(x, m):
    return (x + m - 1) // m * m


def _choose_block_b(B, block_b):
    """Batch tile: >=2 grid steps when possible (v7x megacore), rows % 16 == 0."""
    cap = _round_up(max(-(-B // 2), 16), 16)       # ~half the batch, >= 16
    bb = _round_up(min(block_b, cap), 16)
    bb = min(bb, _round_up(B, 8))                  # never (much) exceed the batch
    return max(bb, 8)


def mlp_kernel(x_ref, w1_ref, b1_ref, w2_ref, b2_ref, w3_ref, b3_ref, o_ref):
    # Cast the x tile to bf16 in-kernel (rides the otherwise-idle VPU slot); all
    # matmuls accumulate in f32 on the MXU; elementwise / softmax stay f32.
    x = x_ref[...].astype(jnp.bfloat16)
    # hidden_1: Linear(784 -> 128) + ReLU
    h1 = jnp.dot(x, w1_ref[...], preferred_element_type=jnp.float32)
    h1 = jnp.maximum(h1 + b1_ref[...], 0.0).astype(jnp.bfloat16)
    # hidden_2: Linear(128 -> 64) + ReLU
    h2 = jnp.dot(h1, w2_ref[...], preferred_element_type=jnp.float32)
    h2 = jnp.maximum(h2 + b2_ref[...], 0.0).astype(jnp.bfloat16)
    # output: Linear(64 -> 10) + softmax over the class axis (f32 throughout)
    logits = jnp.dot(h2, w3_ref[...], preferred_element_type=jnp.float32)
    logits = logits + b3_ref[...]
    m = jnp.max(logits, axis=-1, keepdims=True)
    e = jnp.exp(logits - m)
    denom = jnp.sum(e, axis=-1, keepdims=True)
    o_ref[...] = (e / denom).astype(o_ref.dtype)


@functools.partial(jax.jit, static_argnames=("block_b",))
def mlp_forward(x, w1, b1, w2, b2, w3, b3, *, block_b=1024):
    """x: (B, 784) f32 (or bf16). Weights (in, out) bf16; biases (1, out) f32.

    Use prepare_params() once to convert PyTorch-style f32 parameters.
    """
    B, D_in = x.shape
    D_h1 = w1.shape[1]
    D_h2 = w2.shape[1]
    D_out = w3.shape[1]

    block_b_eff = _choose_block_b(B, block_b)
    grid = (pl.cdiv(B, block_b_eff),)

    # Weights/biases are tiny (<0.25 MiB in bf16): keep the full arrays resident in
    # VMEM via constant index maps; only the batch dimension of x / out is tiled.
    full = lambda shape: pl.BlockSpec(shape, lambda i: (0, 0))

    out = pl.pallas_call(
        mlp_kernel,
        out_shape=jax.ShapeDtypeStruct((B, D_out), jnp.float32),
        grid_spec=pltpu.PrefetchScalarGridSpec(
            num_scalar_prefetch=0,
            grid=grid,
            in_specs=[
                # (block_b, 784): last dim equals the full array dim -> legal, and
                # no padding / dtype pass over x outside the kernel.
                pl.BlockSpec((block_b_eff, D_in), lambda i: (i, 0)),
                full((D_in, D_h1)),
                full((1, D_h1)),
                full((D_h1, D_h2)),
                full((1, D_h2)),
                full((D_h2, D_out)),
                full((1, D_out)),
            ],
            # (block_b, 10): writes exactly the real classes, no padded buffer and
            # no trailing slice pass.
            out_specs=pl.BlockSpec((block_b_eff, D_out), lambda i: (i, 0)),
        ),
        compiler_params=pltpu.CompilerParams(
            dimension_semantics=("parallel",),
        ),
    )(x, w1, b1, w2, b2, w3, b3)

    return out


def prepare_params(w1, b1, w2, b2, w3, b3):
    """One-time parameter prep (outside jit): MXU operands bf16, biases f32."""
    return (w1.astype(jnp.bfloat16), b1.astype(jnp.float32),
            w2.astype(jnp.bfloat16), b2.astype(jnp.float32),
            w3.astype(jnp.bfloat16), b3.astype(jnp.float32))


def init_linear(key, fan_in, fan_out):
    # PyTorch nn.Linear default init: U(-1/sqrt(fan_in), 1/sqrt(fan_in))
    kw, kb = jax.random.split(key)
    bound = 1.0 / jnp.sqrt(fan_in)
    # stored already transposed to (in, out) for x @ W
    w = jax.random.uniform(kw, (fan_in, fan_out), jnp.float32, -bound, bound)
    b = jax.random.uniform(kb, (1, fan_out), jnp.float32, -bound, bound)
    return w, b


def reference_forward(x, w1, b1, w2, b2, w3, b3):
    h1 = jnp.maximum(x @ w1 + b1, 0.0)
    h2 = jnp.maximum(h1 @ w2 + b2, 0.0)
    return jax.nn.softmax(h2 @ w3 + b3, axis=1)


if __name__ == "__main__":
    key = jax.random.PRNGKey(0)
    kx, k1, k2, k3 = jax.random.split(key, 4)

    # 200 rows: not a multiple of the effective tile (112), so this exercises the
    # ragged last block and a 2-step "parallel" grid (both v7x cores get a tile).
    B = 200
    x = jax.random.normal(kx, (B, 784), jnp.float32)

    w1, b1 = init_linear(k1, 784, 128)
    w2, b2 = init_linear(k2, 128, 64)
    w3, b3 = init_linear(k3, 64, 10)

    params = prepare_params(w1, b1, w2, b2, w3, b3)  # done once, outside jit

    out = mlp_forward(x, *params)
    out = jax.block_until_ready(out)

    ref = reference_forward(x, w1, b1, w2, b2, w3, b3)  # f32 reference
    assert out.shape == (B, 10)
    # bf16 MXU operands -> loosened tolerance vs. the f32 reference
    assert jnp.allclose(out, ref, atol=2e-2, rtol=2e-2), float(
        jnp.max(jnp.abs(out - ref)))
    # exact f32 softmax divide -> rows sum to 1 tightly
    assert jnp.allclose(jnp.sum(out, axis=1), 1.0, atol=1e-3)

    print("KERNEL_OK")
</pallas_src>

<mosaic_0001>
module attributes {stable_mosaic.version = 11 : i64} {
  func.func @mlp_kernel(%arg0: i32, %arg1: memref<112x784xf32, #tpu.memory_space<vmem>>, %arg2: memref<784x128xbf16, #tpu.memory_space<vmem>>, %arg3: memref<1x128xf32, #tpu.memory_space<vmem>>, %arg4: memref<128x64xbf16, #tpu.memory_space<vmem>>, %arg5: memref<1x64xf32, #tpu.memory_space<vmem>>, %arg6: memref<64x10xbf16, #tpu.memory_space<vmem>>, %arg7: memref<1x10xf32, #tpu.memory_space<vmem>>, %arg8: memref<112x10xf32, #tpu.memory_space<vmem>>) attributes {dimension_semantics = [#tpu.dimension_semantics<parallel>], iteration_bounds = array<i64: 2>, scalar_prefetch = 0 : i64, scratch_operands = 0 : i64, tpu.core_type = #tpu.core_type<tc>, window_params = [{transform_indices = @transform_0, window_bounds = array<i64: 112, 784>}, {pipeline_mode = #tpu.pipeline_mode<synchronous>, transform_indices = @transform_1, window_bounds = array<i64: 784, 128>}, {pipeline_mode = #tpu.pipeline_mode<synchronous>, transform_indices = @transform_2, window_bounds = array<i64: 1, 128>}, {pipeline_mode = #tpu.pipeline_mode<synchronous>, transform_indices = @transform_3, window_bounds = array<i64: 128, 64>}, {pipeline_mode = #tpu.pipeline_mode<synchronous>, transform_indices = @transform_4, window_bounds = array<i64: 1, 64>}, {pipeline_mode = #tpu.pipeline_mode<synchronous>, transform_indices = @transform_5, window_bounds = array<i64: 64, 10>}, {pipeline_mode = #tpu.pipeline_mode<synchronous>, transform_indices = @transform_6, window_bounds = array<i64: 1, 10>}, {transform_indices = @transform_7, window_bounds = array<i64: 112, 10>}]} {
    %c0 = arith.constant 0 : index
    %c0_0 = arith.constant 0 : index
    %0 = vector.load %arg1[%c0, %c0_0] : memref<112x784xf32, #tpu.memory_space<vmem>>, vector<112x784xf32>
    %1 = arith.truncf %0 : vector<112x784xf32> to vector<112x784xbf16>
    %c0_1 = arith.constant 0 : index
    %c0_2 = arith.constant 0 : index
    %2 = vector.load %arg2[%c0_1, %c0_2] : memref<784x128xbf16, #tpu.memory_space<vmem>>, vector<784x128xbf16>
    %cst = arith.constant dense<0.000000e+00> : vector<112x128xf32>
    %3 = tpu.matmul %1, %2, %cst {dimension_numbers = #tpu.dot_dimension_numbers<[1], [0], [0], [1], [0, 0, 1, 1], [], []>} : vector<112x784xbf16>, vector<784x128xbf16>, vector<112x128xf32> -> vector<112x128xf32>
    %c0_3 = arith.constant 0 : index
    %c0_4 = arith.constant 0 : index
    %4 = vector.load %arg3[%c0_3, %c0_4] : memref<1x128xf32, #tpu.memory_space<vmem>>, vector<1x128xf32>
    %5 = vector.broadcast %4 : vector<1x128xf32> to vector<112x128xf32>
    %6 = arith.addf %3, %5 : vector<112x128xf32>
    %cst_5 = arith.constant 0.000000e+00 : f32
    %7 = vector.broadcast %cst_5 : f32 to vector<112x128xf32>
    %8 = arith.maximumf %6, %7 : vector<112x128xf32>
    %9 = arith.truncf %8 : vector<112x128xf32> to vector<112x128xbf16>
    %c0_6 = arith.constant 0 : index
    %c0_7 = arith.constant 0 : index
    %10 = vector.load %arg4[%c0_6, %c0_7] : memref<128x64xbf16, #tpu.memory_space<vmem>>, vector<128x64xbf16>
    %cst_8 = arith.constant dense<0.000000e+00> : vector<112x64xf32>
    %11 = tpu.matmul %9, %10, %cst_8 {dimension_numbers = #tpu.dot_dimension_numbers<[1], [0], [0], [1], [0, 0, 1, 1], [], []>} : vector<112x128xbf16>, vector<128x64xbf16>, vector<112x64xf32> -> vector<112x64xf32>
    %c0_9 = arith.constant 0 : index
    %c0_10 = arith.constant 0 : index
    %12 = vector.load %arg5[%c0_9, %c0_10] : memref<1x64xf32, #tpu.memory_space<vmem>>, vector<1x64xf32>
    %13 = vector.broadcast %12 : vector<1x64xf32> to vector<112x64xf32>
    %14 = arith.addf %11, %13 : vector<112x64xf32>
    %cst_11 = arith.constant 0.000000e+00 : f32
    %15 = vector.broadcast %cst_11 : f32 to vector<112x64xf32>
    %16 = arith.maximumf %14, %15 : vector<112x64xf32>
    %17 = arith.truncf %16 : vector<112x64xf32> to vector<112x64xbf16>
    %c0_12 = arith.constant 0 : index
    %c0_13 = arith.constant 0 : index
    %18 = vector.load %arg6[%c0_12, %c0_13] : memref<64x10xbf16, #tpu.memory_space<vmem>>, vector<64x10xbf16>
    %cst_14 = arith.constant dense<0.000000e+00> : vector<112x10xf32>
    %19 = tpu.matmul %17, %18, %cst_14 {dimension_numbers = #tpu.dot_dimension_numbers<[1], [0], [0], [1], [0, 0, 1, 1], [], []>} : vector<112x64xbf16>, vector<64x10xbf16>, vector<112x10xf32> -> vector<112x10xf32>
    %c0_15 = arith.constant 0 : index
    %c0_16 = arith.constant 0 : index
    %20 = vector.load %arg7[%c0_15, %c0_16] : memref<1x10xf32, #tpu.memory_space<vmem>>, vector<1x10xf32>
    %21 = vector.broadcast %20 : vector<1x10xf32> to vector<112x10xf32>
    %22 = arith.addf %19, %21 : vector<112x10xf32>
    %cst_17 = arith.constant dense<0xFF800000> : vector<112xf32>
    %23 = vector.multi_reduction <maximumf>, %22, %cst_17 [1] : vector<112x10xf32> to vector<112xf32>
    %24 = vector.shape_cast %23 : vector<112xf32> to vector<112x1xf32>
    %25 = vector.broadcast %24 : vector<112x1xf32> to vector<112x10xf32>
    %26 = arith.subf %22, %25 : vector<112x10xf32>
    %27 = math.exp %26 : vector<112x10xf32>
    %cst_18 = arith.constant dense<0.000000e+00> : vector<112xf32>
    %28 = vector.multi_reduction <add>, %27, %cst_18 [1] : vector<112x10xf32> to vector<112xf32>
    %29 = vector.shape_cast %28 : vector<112xf32> to vector<112x1xf32>
    %30 = vector.broadcast %29 : vector<112x1xf32> to vector<112x10xf32>
    %31 = arith.divf %27, %30 : vector<112x10xf32>
    %c0_19 = arith.constant 0 : index
    %c0_20 = arith.constant 0 : index
    %32 = vector.load %arg8[%c0_19, %c0_20] : memref<112x10xf32, #tpu.memory_space<vmem>>, vector<112x10xf32>
    tpu.vector_store %arg8[%c0_19, %c0_20], %31 {strides = array<i32>} : memref<112x10xf32, #tpu.memory_space<vmem>>, vector<112x10xf32>,
    return
  }
  func.func @transform_0(%arg0: i32) -> (i32, i32) {
    %c0_i32 = arith.constant 0 : i32
    %c0_i32_0 = arith.constant 0 : i32
    return %arg0, %c0_i32 : i32, i32
  }
  func.func @transform_1(%arg0: i32) -> (i32, i32) {
    %c0_i32 = arith.constant 0 : i32
    %c0_i32_0 = arith.constant 0 : i32
    %c0_i32_1 = arith.constant 0 : i32
    return %c0_i32, %c0_i32_0 : i32, i32
  }
  func.func @transform_2(%arg0: i32) -> (i32, i32) {
    %c0_i32 = arith.constant 0 : i32
    %c0_i32_0 = arith.constant 0 : i32
    %c0_i32_1 = arith.constant 0 : i32
    return %c0_i32, %c0_i32_0 : i32, i32
  }
  func.func @transform_3(%arg0: i32) -> (i32, i32) {
    %c0_i32 = arith.constant 0 : i32
    %c0_i32_0 = arith.constant 0 : i32
    %c0_i32_1 = arith.constant 0 : i32
    return %c0_i32, %c0_i32_0 : i32, i32
  }
  func.func @transform_4(%arg0: i32) -> (i32, i32) {
    %c0_i32 = arith.constant 0 : i32
    %c0_i32_0 = arith.constant 0 : i32
    %c0_i32_1 = arith.constant 0 : i32
    return %c0_i32, %c0_i32_0 : i32, i32
  }
  func.func @transform_5(%arg0: i32) -> (i32, i32) {
    %c0_i32 = arith.constant 0 : i32
    %c0_i32_0 = arith.constant 0 : i32
    %c0_i32_1 = arith.constant 0 : i32
    return %c0_i32, %c0_i32_0 : i32, i32
  }
  func.func @transform_6(%arg0: i32) -> (i32, i32) {
    %c0_i32 = arith.constant 0 : i32
    %c0_i32_0 = arith.constant 0 : i32
    %c0_i32_1 = arith.constant 0 : i32
    return %c0_i32, %c0_i32_0 : i32, i32
  }
  func.func @transform_7(%arg0: i32) -> (i32, i32) {
    %c0_i32 = arith.constant 0 : i32
    %c0_i32_0 = arith.constant 0 : i32
    return %arg0, %c0_i32 : i32, i32
  }
}

</mosaic_0001>

<bundles_post_ra>
// kernel: mlp_forward.1
= control target key start
LH: loop header
LB: loop body
LE: loop exit
PB: predicated region body
PF: predicated region fallthrough
CT: control target
= control target key end

     0   :  { %12 = vsyncpa [#allocation3], 0  ;;  %s3641_s0 = inlined_call_operand.hbm [shape: f32[200,784], index: 0, kind: input, shape index: {}]   ;;  %s3642_s1 = inlined_call_operand.hbm [shape: bf16[784,128], index: 1, kind: input, shape index: {}]   ;;  %s3643_s2 = inlined_call_operand.vmem [shape: f32[1,128], index: 2, kind: input, shape index: {}]   ;;  %s3644_s3 = inlined_call_operand.vmem [shape: bf16[128,64], index: 3, kind: input, shape index: {}]   ;;  %s3645_s4 = inlined_call_operand.vmem [shape: f32[1,64], index: 4, kind: input, shape index: {}]   ;;  %s3646_s5 = inlined_call_operand.vmem [shape: bf16[64,10], index: 5, kind: input, shape index: {}]   ;;  %s3647_s6 = inlined_call_operand.vmem [shape: f32[1,10], index: 6, kind: input, shape index: {}]   ;;  %s3648_s7 = inlined_call_operand.vmem [shape: f32[200,10], index: 7, kind: output, shape index: {}]  }
   0x1   :  { %14 = vsyncpa [#allocation3 + $0x1], 0 }
   0x2   :  { %15 = vsyncpa [#allocation5], 0  ;;  %s2932_s24 = smov 0   ;;  %s2934_s25 = smov 0  }
   0x3   :  { %s2936_s26 = smov 0   ;;  %s2938_s27 = smov 0  }
   0x4 LB: > { %s2951_s28 = sadd.s32 4294967295, %s2850_s27   ;;  %s2954_s29 = sadd.s32 1, %s2850_s27   ;;  %s2850_s27 = sphi %s2938_s27, %s3669_s27   ;;  %s2846_s26 = sphi %s2936_s26, %s3668_s26   ;;  %s2842_s25 = sphi %s2934_s25, %s3667_s25   ;;  %s2838_s24 = sphi %s2932_s24, %s3666_s24  }
   0x5   : > { %s25_s30 = ssub.s32 %s2850_s27, %s2954_s29  ;;  %s28_s8 = sadd.s32 1, %s2846_s26 }
   0x6   : > { %p26_p0 = scmp.eq.s32.totalorder %s25_s30, 0  ;;  %p35_p1 = scmp.ne.s32.totalorder %s2846_s26, %s2842_s25 }
   0x7   : > { %p36_p2 = scmp.eq.s32.totalorder %s2850_s27, 0  ;;  %p41_p3 = scmp.ne.s32.totalorder %s2842_s25, %s2838_s24 }
   0x8   : > { %s2964_s9 = scalar_select %p26_p0, %s2846_s26, %s28_s8  }
   0x9   : > { %p2966_p4 = por %p36_p2, %p35_p1  ;;  %p3649_p5 = scmp.eq.s32.totalorder %s2951_s28, 0 }
   0xa   : > { %p191_p6 = scmp.eq.s32.totalorder %s2951_s28, 1  ;;  %p2064_p7 = scmp.ge.s32.totalorder %s2850_s27, 1 }
   0xb   : > { %s3652_s10 = scalar_select %p2966_p4, 1, 0 }
   0xc   : > { %p2975_p8 = por %p3649_p5, %p41_p3  ;;  %p204_p9 = scmp.lt.s32.totalorder %s2850_s27, 3 }
   0xd   : > { %p2980_p10 = por %p191_p6, %p35_p1  ;;  %s2884_s14 = smov [#allocation4]  }
   0xe   : > { %s3653_s11 = scalar_select %p2975_p8, 1, 0 }
   0xf   : > { %s3654_s12 = scalar_select %p2980_p10, 1, 0 }
  0x10   : > { %p2984_p11 = pnand %p2064_p7, %p204_p9  ;;  %s216_s15 = sshll.u32 %s2884_s14, 4  ;;  %s217_s15 = int_to_ptr.vmem [resolvable:$true] %s216_s15 }
  0x11   : > { %s2724_s19 = scalar_lea.hbm %s3642_s1, 6272 }
  0x12   : > { %s3655_s13 = scalar_select %p2984_p11, 1, 0 }
  0x13   : > { %p2492_p12 = pneg %p2984_p11  ;;  %p2725_p0 = scmp.ne.s32.totalorder %s3642_s1, %s2724_s19 }
  0x14   : > { %p2731_p6 = scmp.lt.u32.totalorder %s2724_s19, %s3642_s1 }
  0x15   : > { %p2992_p13 = pnand %p2492_p12, %p3649_p5 }
  0x17   : > { %p2726_p1 = pneg %p2992_p13 }
  0x19   : > { %p2727_p2 = pnand %p2726_p1, %p2725_p0 }
  0x1b   : > { %p2728_p3 = pneg %p2727_p2 }
  0x1d   : > { %p2733_p7 = pnand %p2731_p6, %p2728_p3 }
  0x1f   : > { %2736 = shalt.err (!%p2733_p7)
}
  0x20   : > { %s2737_s24 = scalar_lea.vmem %s217_s15, 6272  ;;  %p2745_p10 = scmp.lt.s32.totalorder %s217_s15, %s217_s15 }
  0x21   : > { %p2738_p9 = scmp.ne.s32.totalorder %s217_s15, %s2737_s24  ;;  %p2746_p8 = scmp.lt.s32.totalorder %s2737_s24, %s2737_s24 }
  0x23   : > { %p2740_p12 = pnand %p2738_p9, %p2726_p1  ;;  %p2747_p11 = por %p2746_p8, %p2745_p10 }
  0x25   : > { %p2741_p5 = pneg %p2740_p12 }
  0x27   : > { %p2748_p4 = pnand %p2747_p11, %p2741_p5 }
  0x29   : > { %2751 = shalt.err (!%p2748_p4)
}
  0x2a   : > { %s2885_s30 = smov 64   ;;  %s2886_s8 = smov 4  }
  0x2b   : > { %2495 = dma.hbm_to_vmem [thread:$0]  (!%p2992_p13), %s3642_s1, 6272, %s217_s15, [#allocation5], %s2885_s30, %s2885_s30, %s2886_s8  }
  0x2c   : > { %p2066_p0 = scmp.ge.s32.totalorder %s2850_s27, 2 }
  0x2d   : > { %p3657_p2 = scmp.ne.s32.totalorder (!%p2066_p0), %s3652_s10, 0 }
  0x2e   : > { %241 = sbr.rel (%p2066_p0) target bundleno = 89 (0x59), region = 40 }
  0x35   : > { %244 = sbr.rel (!%p3657_p2) target bundleno = 89 (0x59), region = 44  ;;  %s245_s18 = sand.u32 (%p3657_p2), 1, %s2846_s26  }
  0x36   : > { %s250_s19 = smul.u32 (%p3657_p2), 14, %s2850_s27  ;;  %s3020_s23 = scalar_lea.sflag (%p3657_p2), [#allocation3], %s245_s18 }
  0x37   : > { %s2483_s20 = smul.u32 (%p3657_p2), 784, %s245_s18 }
  0x38   : > { %s251_s21 = ssub.s32 (%p3657_p2), 25, %s250_s19 }
  0x39   : > { %p252_p4 = scmp.lt.s32.totalorder (%p3657_p2), %s251_s21, 14  ;;  %s249_s15 = scalar_lea.vmem (%p3657_p2), [#allocation2], %s2483_s20 }
  0x3c   : > { %s3671_s21 = smov (!%p252_p4, %s251_s21), 14 }
  0x3d   : > { %s3017_s22 = smul.u32 896, %s3671_s21 }
  0x3f   : > { %s257_s16 = ssub.s32 12544, %s3017_s22 }
  0x40   : > { %258 = vsyncadd %s3020_s23, %s257_s16  ;;  %p2069_p5 = scmp.ne.s32.totalorder %s3017_s22, 0  ;;  %s2497_s10 = smul.u32 12544, %s2850_s27 }
  0x41   : > { %s264_s24 = sshll.u32 %s249_s15, 4  ;;  %s2756_s27 = scalar_lea.hbm %s3641_s0, 22400  ;;  %s3030_s24 = int_to_ptr.vmem [resolvable:$true] %s264_s24 }
  0x42   : > { %s3028_s14 = scalar_lea.hbm %s3641_s0, %s2497_s10 }
  0x43   : > { %s2752_s17 = scalar_lea.hbm %s3028_s14, %s3017_s22  ;;  %p2757_p13 = scmp.lt.u32.totalorder %s3028_s14, %s3641_s0 }
  0x44   : > { %p2753_p8 = scmp.ne.s32.totalorder %s3028_s14, %s2752_s17  ;;  %p2758_p1 = scmp.lt.u32.totalorder %s2756_s27, %s2752_s17 }
  0x45   : > { %p2760_p6 = scmp.lt.u32.totalorder %s2752_s17, %s3028_s14 }
  0x46   : > { %p2754_p10 = pnand %p2753_p8, %p2069_p5  ;;  %p2759_p3 = por %p2758_p1, %p2757_p13 }
  0x48   : > { %p2755_p11 = pneg %p2754_p10  ;;  %p2761_p7 = por %p2760_p6, %p2759_p3 }
  0x4a   : > { %p2762_p9 = pnand %p2761_p7, %p2755_p11 }
  0x4c   : > { %2765 = shalt.err (!%p2762_p9)
}
  0x4d   : > { %s2766_s16 = scalar_lea.vmem %s3030_s24, %s3017_s22  ;;  %s2887_s15 = smov [#allocation2]  }
  0x4e   : > { %p2767_p12 = scmp.ne.s32.totalorder %s3030_s24, %s2766_s16  ;;  %s2770_s10 = sshll.u32 %s2887_s15, 4  ;;  %s2771_s10 = int_to_ptr.vmem [resolvable:$false] %s2770_s10 }
  0x4f   : > { %s2772_s30 = scalar_lea.vmem %s2771_s10, 25088  ;;  %p2773_p4 = scmp.lt.s32.totalorder %s3030_s24, %s2771_s10 }
  0x50   : > { %p2768_p0 = pnand %p2767_p12, %p2069_p5  ;;  %p2774_p8 = scmp.lt.s32.totalorder %s2772_s30, %s2766_s16 }
  0x52   : > { %p2769_p2 = pneg %p2768_p0  ;;  %p2775_p10 = por %p2774_p8, %p2773_p4 }
  0x54   : > { %p2776_p13 = pnand %p2775_p10, %p2769_p2 }
  0x56   : > { %2779 = shalt.err (!%p2776_p13)
}
  0x57   : > { %s2888_s8 = smov 896   ;;  %s2889_s17 = smov 56  }
  0x58   : > { %270 = dma.hbm_to_vmem [thread:$0]  (%p2069_p5), %s3028_s14, %s3017_s22, %s3030_s24, %s3020_s23, %s2888_s8, %s2888_s8, %s2889_s17  }
  0x59 PF: > { %p3658_p11 = scmp.ne.s32.totalorder %s3655_s13, 0 }
  0x5a   : > { %s3060_s18 = sand.u32 (!%p3658_p11), 1, %s2842_s25   ;;  %p3659_p1 = scmp.ne.s32.totalorder (!%p3658_p11), %s3653_s11, 0 }
  0x5b   : > { %276 = sbr.rel (%p3658_p11) target bundleno = 1276 (0x4fc), region = 48  ;;  %s279_s27 = scalar_lea.sflag (!%p3658_p11), [#allocation3], %s3060_s18 }
  0x5c   : > { %s2485_s19 = smul.u32 (!%p3658_p11), 784, %s3060_s18 }
  0x5e   : > { %s3064_s20 = scalar_lea.vmem (!%p3658_p11), [#allocation2], %s2485_s19 }
  0x62   : > { %2829 = dma.done.wait (%p3659_p1), %s279_s27, 12544  }
  0x63   : > { %2831 = vsyncadd (%p3659_p1), %s279_s27, 4294954752  ;;  %p3660_p5 = scmp.eq.s32.totalorder %s2951_s28, 0 }
  0x65   : > { %2833 = dma.done.wait (%p3660_p5), [#allocation5], 6272   ;;  %p3661_p3 = pmov %p3660_p5 }
  0x66   : > { %v2603_v0 = vld [vmem:[#allocation4 + $0x40] sm:$0xff]   ;;  %v2607_v4 = vld [vmem:[#allocation4 + $0x48] sm:$0xff]   ;;  %v2611_v8 = vld [vmem:[#allocation4 + $0x50] sm:$0xff]   ;;  %v2890_v43 = vmov 0.0   ;;  %vm2891_vm0 = vmmov 0   ;;  %vm874_vm1 = vcmask 130048  }
  0x67   : > { %2835 = vsyncadd (%p3661_p3), [#allocation5], 4294961024  ;;  %v2604_v1 = vld [vmem:[#allocation4] sm:$0xff]   ;;  %2165 = vmatprep.subr.bf16.mxu0 %v2603_v0  ;;  %v2608_v5 = vld [vmem:[#allocation4 + $0x8] sm:$0xff]   ;;  %vm1493_vm2 = vcmask 523264   ;;  %vm1604_vm3 = vcmask 80896  }
  0x68   : > { %v2605_v2 = vld [vmem:[#allocation4 + $0xc0] sm:$0xff]   ;;  %2166 = vmatpush3.bf16.msra.mxu0 %v2604_v1  ;;  %v2609_v6 = vld [vmem:[#allocation4 + $0xc8] sm:$0xff]   ;;  %v2612_v9 = vld [vmem:[#allocation4 + $0x10] sm:$0xff]   ;;  %s2486_s27 = smul.u32 112, %s3060_s18  ;;  %p3662_p6 = scmp.ne.s32.totalorder %s3654_s12, 0 }
  0x69   : > { %v2606_v3 = vld [vmem:[#allocation4 + $0x80] sm:$0xff]   ;;  %2223 = vmatprep.subr.bf16.mxu1 %v2605_v2  ;;  %2167 = vmatprep.subr.bf16.mxu0 %v2607_v4  ;;  %v2610_v7 = vld [vmem:[#allocation4 + $0x88] sm:$0xff]   ;;  %v2613_v10 = vld [vmem:[#allocation4 + $0xd0] sm:$0xff]   ;;  %s1780_s18 = smul.u32 (%p3662_p6), 14, %s2951_s28 }
  0x6a   : > { %2224 = vmatpush3.bf16.msra.mxu1 %v2606_v3  ;;  %v2614_v11 = vld [vmem:[#allocation4 + $0x90] sm:$0xff]   ;;  %v2615_v12 = vld [vmem:[#allocation4 + $0x58] sm:$0xff]   ;;  %v2619_v16 = vld [vmem:[#allocation4 + $0x60] sm:$0xff]   ;;  %s2164_s11 = smul.u32 (%p3662_p6), 112, %s2951_s28 }
  0x6b   : > { %2225 = vmatprep.subr.bf16.mxu1 %v2609_v6  ;;  %v2616_v13 = vld [vmem:[#allocation4 + $0x18] sm:$0xff]   ;;  %v2620_v17 = vld [vmem:[#allocation4 + $0x20] sm:$0xff]   ;;  %v2623_v20 = vld [vmem:[#allocation4 + $0x68] sm:$0xff]   ;;  %s1781_s13 = ssub.s32 (%p3662_p6), 25, %s1780_s18 }
  0x6c   : > { %2168 = vmatpush3.bf16.msra.mxu0 %v2608_v5  ;;  %v2617_v14 = vld [vmem:[#allocation4 + $0xd8] sm:$0xff]   ;;  %v2621_v18 = vld [vmem:[#allocation4 + $0xe0] sm:$0xff]   ;;  %v2624_v21 = vld [vmem:[#allocation4 + $0x28] sm:$0xff]   ;;  %p1782_p7 = scmp.lt.s32.totalorder (%p3662_p6), %s1781_s13, 14  ;;  %s3554_s24 = scalar_lea.vmem (%p3662_p6), %s3648_s7, %s2164_s11  }
  0x6d   : > { %2169 = vmatprep.subr.bf16.mxu0 %v2611_v8  ;;  %v2618_v15 = vld [vmem:[#allocation4 + $0x98] sm:$0xff]   ;;  %v2622_v19 = vld [vmem:[#allocation4 + $0xa0] sm:$0xff]   ;;  %v2625_v22 = vld [vmem:[#allocation4 + $0xe8] sm:$0xff]  }
  0x6e   : > { %2226 = vmatpush3.bf16.msra.mxu1 %v2610_v7  ;;  %v2626_v23 = vld [vmem:[#allocation4 + $0xa8] sm:$0xff]   ;;  %v2627_v24 = vld [vmem:[#allocation4 + $0x70] sm:$0xff]   ;;  %v2631_v28 = vld [vmem:[#allocation4 + $0x78] sm:$0xff]  }
  0x6f   : > { %2227 = vmatprep.subr.bf16.mxu1 %v2613_v10  ;;  %v2628_v25 = vld [vmem:[#allocation4 + $0x30] sm:$0xff]   ;;  %v2632_v29 = vld [vmem:[#allocation4 + $0x38] sm:$0xff]   ;;  %v2635_v38 = vld [vmem:[#allocation4 + $0x140] sm:$0xff]  }
  0x70   : > { %2170 = vmatpush3.bf16.msra.mxu0 %v2612_v9  ;;  %v2629_v26 = vld [vmem:[#allocation4 + $0xf0] sm:$0xff]   ;;  %v2633_v30 = vld [vmem:[#allocation4 + $0xf8] sm:$0xff]   ;;  %v2636_v42 = vld [vmem:[#allocation4 + $0x100] sm:$0xff]  }
  0x71   : > { %2171 = vmatprep.subr.bf16.mxu0 %v2615_v12  ;;  %v2630_v27 = vld [vmem:[#allocation4 + $0xb0] sm:$0xff]   ;;  %v329_v31 = vld [vmem:[%s3064_s20 + $0x8] sm:$0xff]  ;;  %v335_v36 = vld [vmem:[%s3064_s20 + $0x38] sm:$0xff] }
  0x72   : > { %2228 = vmatpush3.bf16.msra.mxu1 %v2614_v11  ;;  %v336_v32 = vld [vmem:[%s3064_s20 + $0x40] sm:$0xff]  ;;  %v2634_v34 = vld [vmem:[#allocation4 + $0xb8] sm:$0xff]   ;;  %v338_v40 = vld [vmem:[%s3064_s20 + $0x50] sm:$0xff] }
  0x73   : > { %2229 = vmatprep.subr.bf16.mxu1 %v2617_v14  ;;  %v427_v33 = vpack.c.bf16 %v336_v32, %v329_v31  ;;  %v328_v35 = vld [vmem:[%s3064_s20] sm:$0xff]  ;;  %v331_v39 = vld [vmem:[%s3064_s20 + $0x18] sm:$0xff]  ;;  %v330_v44 = vld [vmem:[%s3064_s20 + $0x10] sm:$0xff] }
  0x74   : > { %2172 = vmatpush3.bf16.msra.mxu0 %v2616_v13  ;;  %v426_v37 = vpack.c.bf16 %v335_v36, %v328_v35  ;;  %v429_v41 = vpack.c.bf16 %v338_v40, %v331_v39  ;;  %v337_v45 = vld [vmem:[%s3064_s20 + $0x48] sm:$0xff]  ;;  %v2637_v47 = vld [vmem:[#allocation4 + $0x180] sm:$0xff]   ;;  %v343_v48 = vld [vmem:[%s3064_s20 + $0x78] sm:$0xff] }
  0x75   : > { %2173 = vmatprep.subr.bf16.mxu0 %v2619_v16  ;;  %928 = vmatprep.mubr.bf16.mxu0 %v427_v33  ;;  %v428_v46 = vpack.c.bf16 %v337_v45, %v330_v44  ;;  %v350_v49 = vld [vmem:[%s3064_s20 + $0xb0] sm:$0xff]  ;;  %v2638_v51 = vld [vmem:[#allocation4 + $0x148] sm:$0xff]   ;;  %v352_v57 = vld [vmem:[%s3064_s20 + $0xc0] sm:$0xff] }
  0x76   : > { %2230 = vmatpush3.bf16.msra.mxu1 %v2618_v15  ;;  %1017 = vmatprep.mubr.bf16.mxu1 %v429_v41  ;;  %v434_v50 = vpack.c.bf16 %v350_v49, %v343_v48  ;;  %v342_v52 = vld [vmem:[%s3064_s20 + $0x70] sm:$0xff]  ;;  %v349_v53 = vld [vmem:[%s3064_s20 + $0xa8] sm:$0xff]  ;;  %v344_v58 = vld [vmem:[%s3064_s20 + $0x80] sm:$0xff] }
  0x77   : > { %2231 = vmatprep.subr.bf16.mxu1 %v2621_v18  ;;  %v433_v54 = vpack.c.bf16 %v349_v53, %v342_v52  ;;  %v2639_v55 = vld [vmem:[#allocation4 + $0x108] sm:$0xff]   ;;  %v2640_v62 = vld [vmem:[#allocation4 + $0x150] sm:$0xff]   ;;  %v2642_v10 = vld [vmem:[#allocation4 + $0x158] sm:$0xff]  }
  0x78   : > { %2174 = vmatpush3.bf16.msra.mxu0 %v2620_v17  ;;  %v345_v56 = vld [vmem:[%s3064_s20 + $0x88] sm:$0xff]  ;;  %v351_v60 = vld [vmem:[%s3064_s20 + $0xb8] sm:$0xff]  ;;  %v364_v0 = vld [vmem:[%s3064_s20 + $0x120] sm:$0xff] }
  0x79   : > { %2175 = vmatprep.subr.bf16.mxu0 %v2623_v20  ;;  %v436_v59 = vpack.c.bf16 %v352_v57, %v345_v56  ;;  %v435_v61 = vpack.c.bf16 %v351_v60, %v344_v58  ;;  %v357_v63 = vld [vmem:[%s3064_s20 + $0xe8] sm:$0xff]  ;;  %v2641_v2 = vld [vmem:[#allocation4 + $0x110] sm:$0xff]   ;;  %v363_v4 = vld [vmem:[%s3064_s20 + $0x118] sm:$0xff] }
  0x7a   : > { %2232 = vmatpush3.bf16.msra.mxu1 %v2622_v19  ;;  %v441_v1 = vpack.c.bf16 %v364_v0, %v357_v63  ;;  %v356_v3 = vld [vmem:[%s3064_s20 + $0xe0] sm:$0xff]  ;;  %v359_v5 = vld [vmem:[%s3064_s20 + $0xf8] sm:$0xff]  ;;  %v366_v6 = vld [vmem:[%s3064_s20 + $0x130] sm:$0xff] }
  0x7b   : > { %2233 = vmatprep.subr.bf16.mxu1 %v2625_v22  ;;  %v358_v7 = vld [vmem:[%s3064_s20 + $0xf0] sm:$0xff]  ;;  %v365_v8 = vld [vmem:[%s3064_s20 + $0x128] sm:$0xff]  ;;  %v443_v9 = vpack.c.bf16 %v366_v6, %v359_v5  ;;  %v440_v11 = vpack.c.bf16 %v363_v4, %v356_v3  ;;  %v371_v13 = vld [vmem:[%s3064_s20 + $0x158] sm:$0xff] }
  0x7c   : > { %2176 = vmatpush3.bf16.msra.mxu0 %v2624_v21  ;;  %v2643_v12 = vld [vmem:[#allocation4 + $0x118] sm:$0xff]   ;;  %v378_v14 = vld [vmem:[%s3064_s20 + $0x190] sm:$0xff]  ;;  %v380_v17 = vld [vmem:[%s3064_s20 + $0x1a0] sm:$0xff]  ;;  %v442_v18 = vpack.c.bf16 %v365_v8, %v358_v7 }
  0x7d   : > { %2177 = vmatprep.subr.bf16.mxu0 %v2627_v24  ;;  %v448_v15 = vpack.c.bf16 %v378_v14, %v371_v13  ;;  %v373_v16 = vld [vmem:[%s3064_s20 + $0x168] sm:$0xff]  ;;  %v370_v19 = vld [vmem:[%s3064_s20 + $0x150] sm:$0xff]  ;;  %v384_v35 = vld [vmem:[%s3064_s20 + $0x1c0] sm:$0xff] }
  0x7e   : > { %2234 = vmatpush3.bf16.msra.mxu1 %v2626_v23  ;;  %v450_v20 = vpack.c.bf16 %v380_v17, %v373_v16  ;;  %v2644_v21 = vld [vmem:[#allocation4 + $0x160] sm:$0xff]   ;;  %v377_v22 = vld [vmem:[%s3064_s20 + $0x188] sm:$0xff]  ;;  %v391_v36 = vld [vmem:[%s3064_s20 + $0x1f8] sm:$0xff] }
  0x7f   : > { %2235 = vmatprep.subr.bf16.mxu1 %v2629_v26  ;;  %v2645_v23 = vld [vmem:[#allocation4 + $0x120] sm:$0xff]   ;;  %v385_v24 = vld [vmem:[%s3064_s20 + $0x1c8] sm:$0xff]  ;;  %v2648_v40 = vld [vmem:[#allocation4 + $0x170] sm:$0xff]   ;;  %v454_v44 = vpack.c.bf16 %v391_v36, %v384_v35 }
  0x80   : > { %2178 = vmatpush3.bf16.msra.mxu0 %v2628_v25  ;;  %v392_v25 = vld [vmem:[%s3064_s20 + $0x200] sm:$0xff]  ;;  %v2646_v32 = vld [vmem:[#allocation4 + $0x168] sm:$0xff]   ;;  %v406_v39 = vld [vmem:[%s3064_s20 + $0x270] sm:$0xff] }
  0x81   : > { %2179 = vmatprep.subr.bf16.mxu0 %v2631_v28  ;;  %v372_v26 = vld [vmem:[%s3064_s20 + $0x160] sm:$0xff]  ;;  %v387_v28 = vld [vmem:[%s3064_s20 + $0x1d8] sm:$0xff]  ;;  %v455_v31 = vpack.c.bf16 %v392_v25, %v385_v24  ;;  %v393_v45 = vld [vmem:[%s3064_s20 + $0x208] sm:$0xff] }
  0x82   : > { %2236 = vmatpush3.bf16.msra.mxu1 %v2630_v27  ;;  %v379_v27 = vld [vmem:[%s3064_s20 + $0x198] sm:$0xff]  ;;  %v2649_v41 = vld [vmem:[#allocation4 + $0x130] sm:$0xff]   ;;  %v333_v3 = vld [vmem:[%s3064_s20 + $0x28] sm:$0xff] }
  0x83   : > { %2237 = vmatprep.subr.bf16.mxu1 %v2633_v30  ;;  %v394_v30 = vld [vmem:[%s3064_s20 + $0x210] sm:$0xff]  ;;  %v2647_v33 = vld [vmem:[#allocation4 + $0x128] sm:$0xff]   ;;  %v2650_v49 = vld [vmem:[#allocation4 + $0x178] sm:$0xff]  }
  0x84   : > { %2180 = vmatpush3.bf16.msra.mxu0 %v2632_v29  ;;  %v447_v29 = vpack.c.bf16 %v377_v22, %v370_v19  ;;  %v398_v53 = vld [vmem:[%s3064_s20 + $0x230] sm:$0xff]  ;;  %v420_v56 = vld [vmem:[%s3064_s20 + $0x2e0] sm:$0xff]  ;;  %v421_v7 = vld [vmem:[%s3064_s20 + $0x2e8] sm:$0xff] }
  0x85   : > { %2281 = vmatprep.subr.bf16.mxu0 %v2635_v38  ;;  %v399_v38 = vld [vmem:[%s3064_s20 + $0x238] sm:$0xff]  ;;  %v400_v58 = vld [vmem:[%s3064_s20 + $0x240] sm:$0xff]  ;;  %v414_v6 = vld [vmem:[%s3064_s20 + $0x2b0] sm:$0xff] }
  0x86   : > { %2238 = vmatpush3.bf16.msra.mxu1 %v2634_v34  ;;  %v449_v34 = vpack.c.bf16 %v379_v27, %v372_v26  ;;  %v462_v48 = vpack.c.bf16 %v406_v39, %v399_v38  ;;  %v340_v4 = vld [vmem:[%s3064_s20 + $0x60] sm:$0xff]  ;;  %v354_v13 = vld [vmem:[%s3064_s20 + $0xd0] sm:$0xff]  ;;  %v355_v25 = vld [vmem:[%s3064_s20 + $0xd8] sm:$0xff] }
  0x87   : > { %2373 = vmatprep.subr.bf16.mxu1 %v2890_v43  ;;  %929 = vmatmul.mubr.bf16.vlgmr.msra.gmra.mrb[0].mxu0 %v426_v37  ;;  %v457_v37 = vpack.c.bf16 %v394_v30, %v387_v28  ;;  %v431_v8 = vpack.c.bf16 %v340_v4, %v333_v3  ;;  %v334_v14 = vld [vmem:[%s3064_s20 + $0x30] sm:$0xff]  ;;  %v368_v22 = vld [vmem:[%s3064_s20 + $0x140] sm:$0xff]  ;;  %v375_v30 = vld [vmem:[%s3064_s20 + $0x178] sm:$0xff] }
  0x88   : > { %2282 = vmatpush3.bf16.msra.mxu0 %v2636_v42  ;;  %936 = vmatprep.mubr.bf16.mxu0 %v434_v50  ;;  %v386_v42 = vld [vmem:[%s3064_s20 + $0x1d0] sm:$0xff]  ;;  %v348_v24 = vld [vmem:[%s3064_s20 + $0xa0] sm:$0xff]  ;;  %v381_v38 = vld [vmem:[%s3064_s20 + $0x1a8] sm:$0xff] }
  0x89   : > { %1018 = vmatmul.mubr.bf16.vlgmr.msra.gmra.mrb[0].mxu1 %v428_v46  ;;  %2283 = vmatprep.subr.bf16.mxu0 %v2638_v51  ;;  %v401_v46 = vld [vmem:[%s3064_s20 + $0x248] sm:$0xff]  ;;  %v456_v50 = vpack.c.bf16 %v393_v45, %v386_v42  ;;  %v346_v19 = vld [vmem:[%s3064_s20 + $0x90] sm:$0xff]  ;;  %v439_v27 = vpack.c.bf16 %v355_v25, %v348_v24  ;;  %v360_v28 = vld [vmem:[%s3064_s20 + $0x100] sm:$0xff] }
  0x8a   : > { %2374 = vmatpush3.bf16.msra.mxu1 %v2637_v47  ;;  %1025 = vmatprep.mubr.bf16.mxu1 %v436_v59  ;;  %v408_v47 = vld [vmem:[%s3064_s20 + $0x280] sm:$0xff]  ;;  %v2651_v51 = vld [vmem:[#allocation4 + $0x138] sm:$0xff]   ;;  %v418_v4 = vld [vmem:[%s3064_s20 + $0x2d0] sm:$0xff] }
  0x8b   : > { %2447 = vmatprep.subr.bf16.mxu1 %v2890_v43  ;;  %v464_v52 = vpack.c.bf16 %v408_v47, %v401_v46  ;;  %v407_v59 = vld [vmem:[%s3064_s20 + $0x278] sm:$0xff]  ;;  %v389_v39 = vld [vmem:[%s3064_s20 + $0x1e8] sm:$0xff]  ;;  %v376_v42 = vld [vmem:[%s3064_s20 + $0x180] sm:$0xff] }
  0x8c   : > { %2284 = vmatpush3.bf16.msra.mxu0 %v2639_v55  ;;  %v413_v55 = vld [vmem:[%s3064_s20 + $0x2a8] sm:$0xff]  ;;  %v463_v63 = vpack.c.bf16 %v407_v59, %v400_v58  ;;  %v388_v47 = vld [vmem:[%s3064_s20 + $0x1e0] sm:$0xff] }
  0x8d   : > { %2285 = vmatprep.subr.bf16.mxu0 %v2640_v62  ;;  %v469_v60 = vpack.c.bf16 %v420_v56, %v413_v55  ;;  %v422_v62 = vld [vmem:[%s3064_s20 + $0x2f0] sm:$0xff]  ;;  %v417_v58 = vld [vmem:[%s3064_s20 + $0x2c8] sm:$0xff]  ;;  %v424_v59 = vld [vmem:[%s3064_s20 + $0x300] sm:$0xff] }
  0x8e   : > { %v402_v56 = vld [vmem:[%s3064_s20 + $0x250] sm:$0xff] }
  0x8f   : > { %937 = vmatmul.mubr.bf16.gmra.mrb[4].mxu0 %v433_v54  ;;  %v405_v54 = vld [vmem:[%s3064_s20 + $0x268] sm:$0xff] }
  0x90   : > { %944 = vmatprep.mubr.bf16.mxu0 %v441_v1  ;;  %2286 = vmatpush3.bf16.msra.mxu0 %v2641_v2  ;;  %v461_v57 = vpack.c.bf16 %v405_v54, %v398_v53  ;;  %v412_v1 = vld [vmem:[%s3064_s20 + $0x2a0] sm:$0xff]  ;;  %v419_v2 = vld [vmem:[%s3064_s20 + $0x2d8] sm:$0xff]  ;;  %v397_v53 = vld [vmem:[%s3064_s20 + $0x228] sm:$0xff] }
  0x91   : > { %1026 = vmatmul.mubr.bf16.gmra.mrb[4].mxu1 %v435_v61  ;;  %2287 = vmatprep.subr.bf16.mxu0 %v2642_v10  ;;  %v415_v61 = vld [vmem:[%s3064_s20 + $0x2b8] sm:$0xff]  ;;  %v468_v5 = vpack.c.bf16 %v419_v2, %v412_v1  ;;  %v332_v10 = vld [vmem:[%s3064_s20 + $0x20] sm:$0xff] }
  0x92   : > { %1033 = vmatprep.mubr.bf16.mxu1 %v443_v9  ;;  %v471_v0 = vpack.c.bf16 %v422_v62, %v415_v61  ;;  %v470_v9 = vpack.c.bf16 %v421_v7, %v414_v6  ;;  %v404_v61 = vld [vmem:[%s3064_s20 + $0x260] sm:$0xff]  ;;  %v411_v62 = vld [vmem:[%s3064_s20 + $0x298] sm:$0xff] }
  0x93   : > { %v416_v1 = vld [vmem:[%s3064_s20 + $0x2c0] sm:$0xff]  ;;  %v423_v2 = vld [vmem:[%s3064_s20 + $0x2f8] sm:$0xff] }
  0x94   : > { %2288 = vmatpush3.bf16.msra.mxu0 %v2643_v12  ;;  %v347_v12 = vld [vmem:[%s3064_s20 + $0x98] sm:$0xff]  ;;  %v472_v3 = vpack.c.bf16 %v423_v2, %v416_v1  ;;  %v2652_v6 = vld [vmem:[%s3644_s3] sm:$0xff]  }
  0x95   : > { %2289 = vmatprep.subr.bf16.mxu0 %v2644_v21  ;;  %v438_v17 = vpack.c.bf16 %v354_v13, %v347_v12  ;;  %v361_v21 = vld [vmem:[%s3064_s20 + $0x108] sm:$0xff]  ;;  %v2658_v13 = vld [vmem:[%s3644_s3 + $0x30] sm:$0xff]  }
  0x96   : > { %v445_v26 = vpack.c.bf16 %v368_v22, %v361_v21  ;;  %v2657_v12 = vld [vmem:[%s3644_s3 + $0x28] sm:$0xff]  }
  0x97   : > { %945 = vmatmul.mubr.bf16.gmra.mrb[8].mxu0 %v440_v11  ;;  %v339_v11 = vld [vmem:[%s3064_s20 + $0x58] sm:$0xff] }
  0x98   : > { %952 = vmatprep.mubr.bf16.mxu0 %v448_v15  ;;  %2290 = vmatpush3.bf16.msra.mxu0 %v2645_v23  ;;  %v341_v15 = vld [vmem:[%s3064_s20 + $0x68] sm:$0xff]  ;;  %v430_v16 = vpack.c.bf16 %v339_v11, %v332_v10  ;;  %v2656_v11 = vld [vmem:[%s3644_s3 + $0x20] sm:$0xff]  }
  0x99   : > { %1034 = vmatmul.mubr.bf16.gmra.mrb[8].mxu1 %v442_v18  ;;  %2291 = vmatprep.subr.bf16.mxu0 %v2646_v32  ;;  %v432_v18 = vpack.c.bf16 %v341_v15, %v334_v14  ;;  %v2655_v10 = vld [vmem:[%s3644_s3 + $0x18] sm:$0xff]   ;;  %v2660_v15 = vld [vmem:[%s3646_s5] sm:$0xff]  }
  0x9a   : > { %1041 = vmatprep.mubr.bf16.mxu1 %v450_v20  ;;  %v353_v20 = vld [vmem:[%s3064_s20 + $0xc8] sm:$0xff] }
  0x9b   : > { %v437_v23 = vpack.c.bf16 %v353_v20, %v346_v19  ;;  %v2659_v14 = vld [vmem:[%s3644_s3 + $0x38] sm:$0xff]   ;;  %v3248_v20 = vld [vmem:[%s3643_s2] ss:$0 sm:$0xff] }
  0x9c   : > { %2292 = vmatpush3.bf16.msra.mxu0 %v2647_v33  ;;  %v362_v33 = vld [vmem:[%s3064_s20 + $0x110] sm:$0xff]  ;;  %v2663_v19 = vld [vmem:[%s3646_s5 + $0x18] sm:$0xff]  }
  0x9d   : > { %2293 = vmatprep.subr.bf16.mxu0 %v2648_v40  ;;  %v396_v40 = vld [vmem:[%s3064_s20 + $0x220] sm:$0xff] }
  0x9e   : > { %v459_v45 = vpack.c.bf16 %v396_v40, %v389_v39 }
  0x9f   : > { %953 = vmatmul.mubr.bf16.gmra.mrb[12].mxu0 %v447_v29  ;;  %v367_v29 = vld [vmem:[%s3064_s20 + $0x138] sm:$0xff] }
  0xa0   : > { %960 = vmatprep.mubr.bf16.mxu0 %v455_v31  ;;  %2294 = vmatpush3.bf16.msra.mxu0 %v2649_v41  ;;  %v382_v31 = vld [vmem:[%s3064_s20 + $0x1b0] sm:$0xff]  ;;  %v444_v32 = vpack.c.bf16 %v367_v29, %v360_v28 }
  0xa1   : > { %1042 = vmatmul.mubr.bf16.gmra.mrb[12].mxu1 %v449_v34  ;;  %2295 = vmatprep.subr.bf16.mxu0 %v2650_v49  ;;  %v369_v34 = vld [vmem:[%s3064_s20 + $0x148] sm:$0xff]  ;;  %v452_v35 = vpack.c.bf16 %v382_v31, %v375_v30  ;;  %v403_v49 = vld [vmem:[%s3064_s20 + $0x258] sm:$0xff] }
  0xa2   : > { %1049 = vmatprep.mubr.bf16.mxu1 %v457_v37  ;;  %v446_v36 = vpack.c.bf16 %v369_v34, %v362_v33  ;;  %v374_v37 = vld [vmem:[%s3064_s20 + $0x170] sm:$0xff] }
  0xa3   : > { %v451_v41 = vpack.c.bf16 %v381_v38, %v374_v37 }
  0xa4   : > { %2296 = vmatpush3.bf16.msra.mxu0 %v2651_v51 }
  0xa5   : > { %2403 = vmatprep.subr.bf16.mxu0 %v2890_v43 }
  0xa7   : > { %961 = vmatmul.mubr.bf16.gmra.mrb[16].mxu0 %v454_v44  ;;  %v383_v44 = vld [vmem:[%s3064_s20 + $0x1b8] sm:$0xff] }
  0xa8   : > { %968 = vmatprep.mubr.bf16.mxu0 %v462_v48  ;;  %v453_v46 = vpack.c.bf16 %v383_v44, %v376_v42  ;;  %v395_v48 = vld [vmem:[%s3064_s20 + $0x218] sm:$0xff] }
  0xa9   : > { %1050 = vmatmul.mubr.bf16.gmra.mrb[16].mxu1 %v456_v50  ;;  %v410_v50 = vld [vmem:[%s3064_s20 + $0x290] sm:$0xff]  ;;  %v458_v51 = vpack.c.bf16 %v395_v48, %v388_v47 }
  0xaa   : > { %1057 = vmatprep.mubr.bf16.mxu1 %v464_v52  ;;  %v390_v52 = vld [vmem:[%s3064_s20 + $0x1f0] sm:$0xff]  ;;  %v466_v54 = vpack.c.bf16 %v410_v50, %v403_v49 }
  0xab   : > { %v460_v55 = vpack.c.bf16 %v397_v53, %v390_v52 }
  0xaf   : > { %969 = vmatmul.mubr.bf16.gmra.mrb[20].mxu0 %v461_v57  ;;  %v409_v57 = vld [vmem:[%s3064_s20 + $0x288] sm:$0xff] }
  0xb0   : > { %976 = vmatprep.mubr.bf16.mxu0 %v469_v60  ;;  %v465_v60 = vpack.c.bf16 %v409_v57, %v402_v56 }
  0xb1   : > { %1058 = vmatmul.mubr.bf16.gmra.mrb[20].mxu1 %v463_v63  ;;  %v473_v63 = vpack.c.bf16 %v424_v59, %v417_v58 }
  0xb2   : > { %1065 = vmatprep.mubr.bf16.mxu1 %v471_v0  ;;  %v467_v0 = vpack.c.bf16 %v411_v62, %v404_v61 }
  0xb7   : > { %977 = vmatmul.mubr.bf16.gmra.mrb[24].mxu0 %v468_v5  ;;  %v425_v5 = vld [vmem:[%s3064_s20 + $0x308] sm:$0xff]  ;;  %s3504_s20 = scalar_lea.vmem [#allocation6], %s2486_s27  }
  0xb8   : > { %1106 = vmatprep.mubr.bf16.mxu0 %v431_v8  ;;  %v474_v7 = vpack.c.bf16 %v425_v5, %v418_v4  ;;  %v2653_v8 = vld [vmem:[%s3644_s3 + $0x8] sm:$0xff]  }
  0xb9   : > { %1066 = vmatmul.mubr.bf16.gmra.mrb[24].mxu1 %v470_v9  ;;  %v2654_v9 = vld [vmem:[%s3644_s3 + $0x10] sm:$0xff]  }
  0xba   : > { %2375 = vmatprep.mubr.msk.bf16.mxu1 %vm2891_vm0, %v2890_v43 }
  0xbf   : > { %1107 = vmatmul.mubr.bf16.vlgmr.msra.gmra.mrb[28].mxu0 %v430_v16  ;;  %v2661_v16 = vld [vmem:[%s3646_s5 + $0x8] sm:$0xff]  }
  0xc0   : > { %1114 = vmatprep.mubr.bf16.mxu0 %v438_v17  ;;  %2404 = vmatpush3.bf16.msra.mxu0 %v2652_v6  ;;  %v2662_v17 = vld [vmem:[%s3646_s5 + $0x10] sm:$0xff]  }
  0xc1   : > { %2376 = vmatmul.mubr.msk.bf16.vlgmr.msra.gmra.mrb[28].mxu1 %vm874_vm1, %v432_v18  ;;  %2405 = vmatprep.subr.bf16.mxu0 %v2890_v43 }
  0xc2   : > { %2379 = vmatprep.mubr.msk.bf16.mxu1 %vm2891_vm0, %v2890_v43  ;;  %2448 = vmatpush3.bf16.msra.mxu1 %v2660_v15 }
  0xc3   : > { %2449 = vmatprep.subr.bf16.mxu1 %v2890_v43 }
  0xc4   : > { %2406 = vmatpush3.bf16.msra.mxu0 %v2653_v8 }
  0xc5   : > { %2407 = vmatprep.subr.bf16.mxu0 %v2890_v43 }
  0xc6   : > { %2450 = vmatpush3.bf16.msra.mxu1 %v2661_v16 }
  0xc7   : > { %1115 = vmatmul.mubr.bf16.gmra.mrb[32].mxu0 %v437_v23  ;;  %2451 = vmatprep.subr.bf16.mxu1 %v2890_v43 }
  0xc8   : > { %1122 = vmatprep.mubr.bf16.mxu0 %v445_v26  ;;  %2408 = vmatpush3.bf16.msra.mxu0 %v2654_v9 }
  0xc9   : > { %2380 = vmatmul.mubr.msk.bf16.gmra.mrb[32].mxu1 %vm874_vm1, %v439_v27  ;;  %2409 = vmatprep.subr.bf16.mxu0 %v2890_v43 }
  0xca   : > { %2383 = vmatprep.mubr.msk.bf16.mxu1 %vm2891_vm0, %v2890_v43  ;;  %2452 = vmatpush3.bf16.msra.mxu1 %v2662_v17 }
  0xcb   : > { %2453 = vmatprep.subr.bf16.mxu1 %v2890_v43 }
  0xcc   : > { %2410 = vmatpush3.bf16.msra.mxu0 %v2655_v10 }
  0xcd   : > { %2411 = vmatprep.subr.bf16.mxu0 %v2890_v43 }
  0xce   : > { %2454 = vmatpush3.bf16.msra.mxu1 %v2663_v19 }
  0xcf   : > { %1123 = vmatmul.mubr.bf16.gmra.mrb[36].mxu0 %v444_v32 }
  0xd0   : > { %1130 = vmatprep.mubr.bf16.mxu0 %v452_v35  ;;  %2412 = vmatpush3.bf16.msra.mxu0 %v2656_v11 }
  0xd1   : > { %2384 = vmatmul.mubr.msk.bf16.gmra.mrb[36].mxu1 %vm874_vm1, %v446_v36  ;;  %2413 = vmatprep.subr.bf16.mxu0 %v2890_v43 }
  0xd2   : > { %2387 = vmatprep.mubr.msk.bf16.mxu1 %vm2891_vm0, %v2890_v43 }
  0xd4   : > { %2414 = vmatpush3.bf16.msra.mxu0 %v2657_v12 }
  0xd5   : > { %2415 = vmatprep.subr.bf16.mxu0 %v2890_v43 }
  0xd7   : > { %1131 = vmatmul.mubr.bf16.gmra.mrb[40].mxu0 %v451_v41 }
  0xd8   : > { %1138 = vmatprep.mubr.bf16.mxu0 %v459_v45  ;;  %2416 = vmatpush3.bf16.msra.mxu0 %v2658_v13 }
  0xd9   : > { %2388 = vmatmul.mubr.msk.bf16.gmra.mrb[40].mxu1 %vm874_vm1, %v453_v46  ;;  %2417 = vmatprep.subr.bf16.mxu0 %v2890_v43 }
  0xda   : > { %2391 = vmatprep.mubr.msk.bf16.mxu1 %vm2891_vm0, %v2890_v43 }
  0xdc   : > { %2418 = vmatpush3.bf16.msra.mxu0 %v2659_v14 }
  0xdf   : > { %1139 = vmatmul.mubr.bf16.gmra.mrb[44].mxu0 %v458_v51 }
  0xe0   : > { %1146 = vmatprep.mubr.bf16.mxu0 %v466_v54 }
  0xe1   : > { %2392 = vmatmul.mubr.msk.bf16.gmra.mrb[44].mxu1 %vm874_vm1, %v460_v55 }
  0xe2   : > { %2395 = vmatprep.mubr.msk.bf16.mxu1 %vm2891_vm0, %v2890_v43 }
  0xe7   : > { %1147 = vmatmul.mubr.bf16.gmra.mrb[48].mxu0 %v465_v60 }
  0xe8   : > { %1154 = vmatprep.mubr.bf16.mxu0 %v473_v63 }
  0xe9   : > { %2396 = vmatmul.mubr.msk.bf16.gmra.mrb[48].mxu1 %vm874_vm1, %v467_v0 }
  0xea   : > { %2399 = vmatprep.mubr.msk.bf16.mxu1 %vm2891_vm0, %v2890_v43 }
  0xef   : > { %1155 = vmatmul.mubr.bf16.gmra.mrb[52].mxu0 %v472_v3 }
  0xf0   : > { %2419 = vmatprep.mubr.msk.bf16.mxu0 %vm2891_vm0, %v2890_v43 }
  0xf1   : > { %2400 = vmatmul.mubr.msk.bf16.gmra.mrb[52].mxu1 %vm874_vm1, %v474_v7 }
  0xf2   : > { %2455 = vmatprep.mubr.msk.bf16.mxu1 %vm2891_vm0, %v2890_v43 }
 0x15a   : > { %v2181_v18 = vpop.f32.mrb[0].mxu0 }
 0x15b   : > { %v2182_v21 = vpop.f32.mrb[1].mxu0 }
 0x15c   : > { %v2183_v22 = vadd.f32 %v2182_v21, %v2181_v18  ;;  %v2184_v23 = vpop.f32.mrb[2].mxu0  ;;  %v2239_v24 = vpop.f32.mrb[0].mxu1 }
 0x15d   : > { %v2185_v25 = vpop.f32.mrb[3].mxu0  ;;  %v2240_v28 = vpop.f32.mrb[1].mxu1 }
 0x15e   : > { %v931_v26 = vadd.f32 %v2183_v22, %v3248_v20  ;;  %v2186_v27 = vadd.f32 %v2185_v25, %v2184_v23  ;;  %v2241_v29 = vadd.f32 %v2240_v28, %v2239_v24  ;;  %v2242_v30 = vpop.f32.mrb[2].mxu1 }
 0x15f   : > { %v2243_v32 = vpop.f32.mrb[3].mxu1 }
 0x160   : > { %v934_v31 = vadd.f32 %v2186_v27, %v3248_v20  ;;  %v3253_v33 = vadd.f32 %v2241_v29, %v931_v26  ;;  %v2244_v34 = vadd.f32 %v2243_v32, %v2242_v30 }
 0x162   : > { %v2187_v35 = vpop.f32.mrb[4].mxu0  ;;  %v3255_v36 = vadd.f32 %v2244_v34, %v934_v31 }
 0x163   : > { %v2188_v37 = vpop.f32.mrb[5].mxu0 }
 0x164   : > { %v2189_v38 = vadd.f32 %v2188_v37, %v2187_v35  ;;  %v2190_v39 = vpop.f32.mrb[6].mxu0  ;;  %v2245_v40 = vpop.f32.mrb[4].mxu1 }
 0x165   : > { %v2191_v41 = vpop.f32.mrb[7].mxu0  ;;  %v2246_v45 = vpop.f32.mrb[5].mxu1 }
 0x166   : > { %v939_v42 = vadd.f32 %v2189_v38, %v3248_v20  ;;  %v2192_v44 = vadd.f32 %v2191_v41, %v2190_v39  ;;  %v2247_v46 = vadd.f32 %v2246_v45, %v2245_v40  ;;  %v2248_v47 = vpop.f32.mrb[6].mxu1 }
 0x167   : > { %v2249_v49 = vpop.f32.mrb[7].mxu1 }
 0x168   : > { %v942_v48 = vadd.f32 %v2192_v44, %v3248_v20  ;;  %v3259_v50 = vadd.f32 %v2247_v46, %v939_v42  ;;  %v2250_v51 = vadd.f32 %v2249_v49, %v2248_v47 }
 0x16a   : > { %v2193_v52 = vpop.f32.mrb[8].mxu0  ;;  %v3261_v53 = vadd.f32 %v2250_v51, %v942_v48 }
 0x16b   : > { %v2194_v54 = vpop.f32.mrb[9].mxu0 }
 0x16c   : > { %v2195_v55 = vadd.f32 %v2194_v54, %v2193_v52  ;;  %v2196_v56 = vpop.f32.mrb[10].mxu0  ;;  %v2251_v57 = vpop.f32.mrb[8].mxu1 }
 0x16d   : > { %v2197_v58 = vpop.f32.mrb[11].mxu0  ;;  %v2252_v61 = vpop.f32.mrb[9].mxu1 }
 0x16e   : > { %v947_v59 = vadd.f32 %v2195_v55, %v3248_v20  ;;  %v2198_v60 = vadd.f32 %v2197_v58, %v2196_v56  ;;  %v2253_v62 = vadd.f32 %v2252_v61, %v2251_v57  ;;  %v2254_v63 = vpop.f32.mrb[10].mxu1 }
 0x16f   : > { %v2255_v1 = vpop.f32.mrb[11].mxu1 }
 0x170   : > { %v950_v0 = vadd.f32 %v2198_v60, %v3248_v20  ;;  %v3265_v2 = vadd.f32 %v2253_v62, %v947_v59  ;;  %v2256_v3 = vadd.f32 %v2255_v1, %v2254_v63 }
 0x172   : > { %v2199_v4 = vpop.f32.mrb[12].mxu0  ;;  %v3267_v5 = vadd.f32 %v2256_v3, %v950_v0 }
 0x173   : > { %v2200_v6 = vpop.f32.mrb[13].mxu0 }
 0x174   : > { %v2201_v7 = vadd.f32 %v2200_v6, %v2199_v4  ;;  %v2202_v8 = vpop.f32.mrb[14].mxu0  ;;  %v2257_v9 = vpop.f32.mrb[12].mxu1 }
 0x175   : > { %v2203_v10 = vpop.f32.mrb[15].mxu0  ;;  %v2258_v13 = vpop.f32.mrb[13].mxu1 }
 0x176   : > { %v955_v11 = vadd.f32 %v2201_v7, %v3248_v20  ;;  %v2204_v12 = vadd.f32 %v2203_v10, %v2202_v8  ;;  %v2259_v14 = vadd.f32 %v2258_v13, %v2257_v9  ;;  %v2260_v15 = vpop.f32.mrb[14].mxu1 }
 0x177   : > { %v2261_v17 = vpop.f32.mrb[15].mxu1 }
 0x178   : > { %v958_v16 = vadd.f32 %v2204_v12, %v3248_v20  ;;  %v3271_v18 = vadd.f32 %v2259_v14, %v955_v11  ;;  %v2262_v19 = vadd.f32 %v2261_v17, %v2260_v15 }
 0x17a   : > { %v2205_v21 = vpop.f32.mrb[16].mxu0  ;;  %v3273_v22 = vadd.f32 %v2262_v19, %v958_v16 }
 0x17b   : > { %v2206_v23 = vpop.f32.mrb[17].mxu0 }
 0x17c   : > { %v2207_v24 = vadd.f32 %v2206_v23, %v2205_v21  ;;  %v2208_v25 = vpop.f32.mrb[18].mxu0  ;;  %v2263_v26 = vpop.f32.mrb[16].mxu1 }
 0x17d   : > { %v2209_v27 = vpop.f32.mrb[19].mxu0  ;;  %v2264_v30 = vpop.f32.mrb[17].mxu1 }
 0x17e   : > { %v963_v28 = vadd.f32 %v2207_v24, %v3248_v20  ;;  %v2210_v29 = vadd.f32 %v2209_v27, %v2208_v25  ;;  %v2265_v31 = vadd.f32 %v2264_v30, %v2263_v26  ;;  %v2266_v32 = vpop.f32.mrb[18].mxu1 }
 0x17f   : > { %v2267_v35 = vpop.f32.mrb[19].mxu1 }
 0x180   : > { %v966_v34 = vadd.f32 %v2210_v29, %v3248_v20  ;;  %v3277_v37 = vadd.f32 %v2265_v31, %v963_v28  ;;  %v2268_v38 = vadd.f32 %v2267_v35, %v2266_v32 }
 0x182   : > { %v2211_v39 = vpop.f32.mrb[20].mxu0  ;;  %v3279_v40 = vadd.f32 %v2268_v38, %v966_v34 }
 0x183   : > { %v2212_v41 = vpop.f32.mrb[21].mxu0 }
 0x184   : > { %v2213_v42 = vadd.f32 %v2212_v41, %v2211_v39  ;;  %v2214_v44 = vpop.f32.mrb[22].mxu0  ;;  %v2269_v45 = vpop.f32.mrb[20].mxu1 }
 0x185   : > { %v2215_v46 = vpop.f32.mrb[23].mxu0  ;;  %v2270_v49 = vpop.f32.mrb[21].mxu1 }
 0x186   : > { %v971_v47 = vadd.f32 %v2213_v42, %v3248_v20  ;;  %v2216_v48 = vadd.f32 %v2215_v46, %v2214_v44  ;;  %v2271_v51 = vadd.f32 %v2270_v49, %v2269_v45  ;;  %v2272_v52 = vpop.f32.mrb[22].mxu1 }
 0x187   : > { %v2273_v55 = vpop.f32.mrb[23].mxu1 }
 0x188   : > { %v974_v54 = vadd.f32 %v2216_v48, %v3248_v20  ;;  %v3283_v56 = vadd.f32 %v2271_v51, %v971_v47  ;;  %v2274_v57 = vadd.f32 %v2273_v55, %v2272_v52 }
 0x18a   : > { %v2217_v58 = vpop.f32.mrb[24].mxu0  ;;  %v3285_v59 = vadd.f32 %v2274_v57, %v974_v54 }
 0x18b   : > { %v2218_v60 = vpop.f32.mrb[25].mxu0 }
 0x18c   : > { %v2219_v61 = vadd.f32 %v2218_v60, %v2217_v58  ;;  %v2220_v62 = vpop.f32.mrb[26].mxu0  ;;  %v2275_v63 = vpop.f32.mrb[24].mxu1 }
 0x18d   : > { %v2221_v0 = vpop.f32.mrb[27].mxu0  ;;  %v2276_v4 = vpop.f32.mrb[25].mxu1 }
 0x18e   : > { %v979_v1 = vadd.f32 %v2219_v61, %v3248_v20  ;;  %v2222_v3 = vadd.f32 %v2221_v0, %v2220_v62  ;;  %v2277_v6 = vadd.f32 %v2276_v4, %v2275_v63  ;;  %v2278_v7 = vpop.f32.mrb[26].mxu1 }
 0x18f   : > { %v2279_v9 = vpop.f32.mrb[27].mxu1 }
 0x190   : > { %v982_v8 = vadd.f32 %v2222_v3, %v3248_v20  ;;  %v3289_v10 = vadd.f32 %v2277_v6, %v979_v1  ;;  %v2280_v11 = vadd.f32 %v2279_v9, %v2278_v7 }
 0x192   : > { %v2297_v12 = vpop.f32.mrb[28].mxu0  ;;  %v3291_v13 = vadd.f32 %v2280_v11, %v982_v8 }
 0x193   : > { %v2298_v14 = vpop.f32.mrb[29].mxu0 }
 0x194   : > { %v2299_v15 = vadd.f32 %v2298_v14, %v2297_v12  ;;  %v2300_v16 = vpop.f32.mrb[30].mxu0  ;;  %v1197_v19 = vpop.f32.mrb[28].mxu1 }
 0x195   : > { %v2301_v17 = vpop.f32.mrb[31].mxu0  ;;  %v2377_v24 = vpop.f32.mrb[29].mxu1 }
 0x196   : > { %v2302_v21 = vadd.f32 %v2301_v17, %v2300_v16  ;;  %v1109_v23 = vadd.f32 %v2299_v15, %v3253_v33  ;;  %v1200_v25 = vpop.f32.mrb[30].mxu1 }
 0x197   : > { %v2378_v27 = vpop.f32.mrb[31].mxu1 }
 0x198   : > { %v1198_v26 = vadd.f32 %v1197_v19, %v1109_v23  ;;  %v1112_v20 = vadd.f32 %v2302_v21, %v3255_v36 }
 0x19a   : > { %v1201_v28 = vadd.f32 %v1200_v25, %v1112_v20  ;;  %v2303_v29 = vpop.f32.mrb[32].mxu0  ;;  %v1252_v31 = vmax.f32 %v1198_v26, 0.0 }
 0x19b   : > { %v2304_v30 = vpop.f32.mrb[33].mxu0 }
 0x19c   : > { %v1253_v32 = vmax.f32 %v1201_v28, 0.0  ;;  %v2305_v34 = vadd.f32 %v2304_v30, %v2303_v29  ;;  %v2306_v35 = vpop.f32.mrb[34].mxu0  ;;  %v1205_v39 = vpop.f32.mrb[32].mxu1 }
 0x19d   : > { %v2307_v38 = vpop.f32.mrb[35].mxu0  ;;  %v2381_v33 = vpop.f32.mrb[33].mxu1 }
 0x19e   : > { %v1266_v41 = vpack.c.bf16 %v1253_v32, %v1252_v31  ;;  %v2308_v42 = vadd.f32 %v2307_v38, %v2306_v35  ;;  %v1117_v44 = vadd.f32 %v2305_v34, %v3259_v50  ;;  %v1208_v45 = vpop.f32.mrb[34].mxu1 }
 0x19f   : > { %v2382_v36 = vpop.f32.mrb[35].mxu1 }
 0x1a0   : > { %v1206_v46 = vadd.f32 %v1205_v39, %v1117_v44  ;;  %v1120_v47 = vadd.f32 %v2308_v42, %v3261_v53  ;;  %2420 = vmatmul.mubr.bf16.vlgmr.msra.gmra.mrb[56].mxu0 %v1266_v41 }
 0x1a1   : > { %2423 = vmatprep.mubr.msk.bf16.mxu0 %vm2891_vm0, %v2890_v43 }
 0x1a2   : > { %v1209_v48 = vadd.f32 %v1208_v45, %v1120_v47  ;;  %v2309_v49 = vpop.f32.mrb[36].mxu0  ;;  %v1254_v52 = vmax.f32 %v1206_v46, 0.0 }
 0x1a3   : > { %v2310_v51 = vpop.f32.mrb[37].mxu0 }
 0x1a4   : > { %v1255_v54 = vmax.f32 %v1209_v48, 0.0  ;;  %v2311_v55 = vadd.f32 %v2310_v51, %v2309_v49  ;;  %v2312_v57 = vpop.f32.mrb[38].mxu0  ;;  %v1213_v60 = vpop.f32.mrb[36].mxu1 }
 0x1a5   : > { %v2313_v58 = vpop.f32.mrb[39].mxu0  ;;  %v2385_v63 = vpop.f32.mrb[37].mxu1 }
 0x1a6   : > { %v1267_v50 = vpack.c.bf16 %v1255_v54, %v1254_v52  ;;  %v2314_v61 = vadd.f32 %v2313_v58, %v2312_v57  ;;  %v1125_v62 = vadd.f32 %v2311_v55, %v3265_v2  ;;  %v1216_v53 = vpop.f32.mrb[38].mxu1 }
 0x1a7   : > { %v2386_v3 = vpop.f32.mrb[39].mxu1 }
 0x1a8   : > { %v1214_v0 = vadd.f32 %v1213_v60, %v1125_v62  ;;  %v1128_v1 = vadd.f32 %v2314_v61, %v3267_v5  ;;  %2424 = vmatmul.mubr.bf16.gmra.mrb[60].mxu0 %v1267_v50 }
 0x1a9   : > { %2427 = vmatprep.mubr.msk.bf16.mxu0 %vm2891_vm0, %v2890_v43 }
 0x1aa   : > { %v1217_v4 = vadd.f32 %v1216_v53, %v1128_v1  ;;  %v2315_v6 = vpop.f32.mrb[40].mxu0  ;;  %v1256_v8 = vmax.f32 %v1214_v0, 0.0 }
 0x1ab   : > { %v2316_v7 = vpop.f32.mrb[41].mxu0 }
 0x1ac   : > { %v1257_v9 = vmax.f32 %v1217_v4, 0.0  ;;  %v2317_v11 = vadd.f32 %v2316_v7, %v2315_v6  ;;  %v2318_v12 = vpop.f32.mrb[42].mxu0  ;;  %v1221_v15 = vpop.f32.mrb[40].mxu1 }
 0x1ad   : > { %v2319_v14 = vpop.f32.mrb[43].mxu0  ;;  %v2389_v19 = vpop.f32.mrb[41].mxu1 }
 0x1ae   : > { %v1268_v2 = vpack.c.bf16 %v1257_v9, %v1256_v8  ;;  %v2320_v16 = vadd.f32 %v2319_v14, %v2318_v12  ;;  %v1133_v17 = vadd.f32 %v2317_v11, %v3271_v18  ;;  %v1224_v5 = vpop.f32.mrb[42].mxu1 }
 0x1af   : > { %v2390_v24 = vpop.f32.mrb[43].mxu1 }
 0x1b0   : > { %v1222_v21 = vadd.f32 %v1221_v15, %v1133_v17  ;;  %v1136_v23 = vadd.f32 %v2320_v16, %v3273_v22  ;;  %2428 = vmatmul.mubr.bf16.gmra.mrb[64].mxu0 %v1268_v2  ;;  %v3322_v17 = vld [vmem:[%s3645_s4] ss:$0 sm:$0xff] }
 0x1b1   : > { %2431 = vmatprep.mubr.msk.bf16.mxu0 %vm2891_vm0, %v2890_v43 }
 0x1b2   : > { %v1225_v25 = vadd.f32 %v1224_v5, %v1136_v23  ;;  %v2321_v26 = vpop.f32.mrb[44].mxu0  ;;  %v1258_v27 = vmax.f32 %v1222_v21, 0.0 }
 0x1b3   : > { %v2322_v20 = vpop.f32.mrb[45].mxu0 }
 0x1b4   : > { %v1259_v28 = vmax.f32 %v1225_v25, 0.0  ;;  %v2323_v29 = vadd.f32 %v2322_v20, %v2321_v26  ;;  %v2324_v30 = vpop.f32.mrb[46].mxu0  ;;  %v1229_v32 = vpop.f32.mrb[44].mxu1 }
 0x1b5   : > { %v2325_v31 = vpop.f32.mrb[47].mxu0  ;;  %v2393_v38 = vpop.f32.mrb[45].mxu1 }
 0x1b6   : > { %v1269_v18 = vpack.c.bf16 %v1259_v28, %v1258_v27  ;;  %v2326_v34 = vadd.f32 %v2325_v31, %v2324_v30  ;;  %v1141_v35 = vadd.f32 %v2323_v29, %v3277_v37  ;;  %v1232_v22 = vpop.f32.mrb[46].mxu1 }
 0x1b7   : > { %v2394_v42 = vpop.f32.mrb[47].mxu1 }
 0x1b8   : > { %v1230_v39 = vadd.f32 %v1229_v32, %v1141_v35  ;;  %v1144_v41 = vadd.f32 %v2326_v34, %v3279_v40  ;;  %2432 = vmatmul.mubr.bf16.gmra.mrb[68].mxu0 %v1269_v18 }
 0x1b9   : > { %2435 = vmatprep.mubr.msk.bf16.mxu0 %vm2891_vm0, %v2890_v43 }
 0x1ba   : > { %v1233_v44 = vadd.f32 %v1232_v22, %v1144_v41  ;;  %v2327_v33 = vpop.f32.mrb[48].mxu0  ;;  %v1260_v46 = vmax.f32 %v1230_v39, 0.0 }
 0x1bb   : > { %v2328_v45 = vpop.f32.mrb[49].mxu0 }
 0x1bc   : > { %v1261_v47 = vmax.f32 %v1233_v44, 0.0  ;;  %v2329_v36 = vadd.f32 %v2328_v45, %v2327_v33  ;;  %v2330_v48 = vpop.f32.mrb[50].mxu0  ;;  %v1237_v51 = vpop.f32.mrb[48].mxu1 }
 0x1bd   : > { %v2331_v49 = vpop.f32.mrb[51].mxu0  ;;  %v2397_v55 = vpop.f32.mrb[49].mxu1 }
 0x1be   : > { %v1270_v37 = vpack.c.bf16 %v1261_v47, %v1260_v46  ;;  %v2332_v52 = vadd.f32 %v2331_v49, %v2330_v48  ;;  %v1149_v54 = vadd.f32 %v2329_v36, %v3283_v56  ;;  %v1240_v40 = vpop.f32.mrb[50].mxu1 }
 0x1bf   : > { %v2398_v60 = vpop.f32.mrb[51].mxu1 }
 0x1c0   : > { %v1238_v57 = vadd.f32 %v1237_v51, %v1149_v54  ;;  %v1152_v58 = vadd.f32 %v2332_v52, %v3285_v59  ;;  %2436 = vmatmul.mubr.bf16.gmra.mrb[72].mxu0 %v1270_v37 }
 0x1c1   : > { %2439 = vmatprep.mubr.msk.bf16.mxu0 %vm2891_vm0, %v2890_v43 }
 0x1c2   : > { %v1241_v50 = vadd.f32 %v1240_v40, %v1152_v58  ;;  %v2333_v61 = vpop.f32.mrb[52].mxu0  ;;  %v1262_v63 = vmax.f32 %v1238_v57, 0.0 }
 0x1c3   : > { %v2334_v62 = vpop.f32.mrb[53].mxu0 }
 0x1c4   : > { %v1263_v53 = vmax.f32 %v1241_v50, 0.0  ;;  %v2335_v0 = vadd.f32 %v2334_v62, %v2333_v61  ;;  %v2336_v1 = vpop.f32.mrb[54].mxu0  ;;  %v1245_v4 = vpop.f32.mrb[52].mxu1 }
 0x1c5   : > { %v2337_v3 = vpop.f32.mrb[55].mxu0  ;;  %v2401_v8 = vpop.f32.mrb[53].mxu1 }
 0x1c6   : > { %v1271_v56 = vpack.c.bf16 %v1263_v53, %v1262_v63  ;;  %v2338_v6 = vadd.f32 %v2337_v3, %v2336_v1  ;;  %v1157_v7 = vadd.f32 %v2335_v0, %v3289_v10  ;;  %v1248_v59 = vpop.f32.mrb[54].mxu1 }
 0x1c7   : > { %v2402_v12 = vpop.f32.mrb[55].mxu1 }
 0x1c8   : > { %v1246_v9 = vadd.f32 %v1245_v4, %v1157_v7  ;;  %v1160_v11 = vadd.f32 %v2338_v6, %v3291_v13  ;;  %2440 = vmatmul.mubr.bf16.gmra.mrb[76].mxu0 %v1271_v56 }
 0x1c9   : > { %2443 = vmatprep.mubr.msk.bf16.mxu0 %vm2891_vm0, %v2890_v43 }
 0x1ca   : > { %v1249_v14 = vadd.f32 %v1248_v59, %v1160_v11  ;;  %v1264_v15 = vmax.f32 %v1246_v9, 0.0 }
 0x1cc   : > { %v1265_v2 = vmax.f32 %v1249_v14, 0.0 }
 0x1ce   : > { %v1272_v16 = vpack.c.bf16 %v1265_v2, %v1264_v15 }
 0x1d0   : > { %2444 = vmatmul.mubr.bf16.gmra.mrb[80].mxu0 %v1272_v16 }
 0x273   : > { %v1378_v10 = vpop.f32.mrb[56].mxu0 }
 0x274   : > { %v1379_v19 = vadd.f32 %v3322_v17, %v1378_v10  ;;  %v2421_v5 = vpop.f32.mrb[57].mxu0 }
 0x275   : > { %v1381_v13 = vpop.f32.mrb[58].mxu0 }
 0x276   : > { %v1382_v21 = vadd.f32 %v3322_v17, %v1381_v13  ;;  %v2422_v23 = vpop.f32.mrb[59].mxu0  ;;  %v1433_v24 = vmax.f32 %v1379_v19, 0.0  ;;  %v3360_v19 = vld [vmem:[%s3647_s6] ss:$0 sm:$0xff] }
 0x278   : > { %v1434_v25 = vmax.f32 %v1382_v21, 0.0 }
 0x27a   : > { %v1447_v26 = vpack.c.bf16 %v1434_v25, %v1433_v24 }
 0x27b   : > { %v1386_v20 = vpop.f32.mrb[60].mxu0 }
 0x27c   : > { %v1387_v27 = vadd.f32 %v3322_v17, %v1386_v20  ;;  %v2425_v28 = vpop.f32.mrb[61].mxu0  ;;  %2456 = vmatmul.mubr.msk.bf16.vlgmr.msra.gmra.mrb[56].mxu1 %vm1493_vm2, %v1447_v26 }
 0x27d   : > { %v1389_v29 = vpop.f32.mrb[62].mxu0  ;;  %2459 = vmatprep.mubr.msk.bf16.mxu1 %vm2891_vm0, %v2890_v43 }
 0x27e   : > { %v1390_v30 = vadd.f32 %v3322_v17, %v1389_v29  ;;  %v2426_v31 = vpop.f32.mrb[63].mxu0  ;;  %v1435_v32 = vmax.f32 %v1387_v27, 0.0 }
 0x280   : > { %v1436_v18 = vmax.f32 %v1390_v30, 0.0 }
 0x282   : > { %v1448_v34 = vpack.c.bf16 %v1436_v18, %v1435_v32 }
 0x283   : > { %v1394_v35 = vpop.f32.mrb[64].mxu0 }
 0x284   : > { %v1395_v38 = vadd.f32 %v3322_v17, %v1394_v35  ;;  %v2429_v22 = vpop.f32.mrb[65].mxu0  ;;  %2460 = vmatmul.mubr.msk.bf16.gmra.mrb[60].mxu1 %vm1493_vm2, %v1448_v34 }
 0x285   : > { %v1397_v39 = vpop.f32.mrb[66].mxu0  ;;  %2463 = vmatprep.mubr.msk.bf16.mxu1 %vm2891_vm0, %v2890_v43 }
 0x286   : > { %v1398_v41 = vadd.f32 %v3322_v17, %v1397_v39  ;;  %v2430_v42 = vpop.f32.mrb[67].mxu0  ;;  %v1437_v44 = vmax.f32 %v1395_v38, 0.0 }
 0x288   : > { %v1438_v33 = vmax.f32 %v1398_v41, 0.0 }
 0x28a   : > { %v1449_v45 = vpack.c.bf16 %v1438_v33, %v1437_v44 }
 0x28b   : > { %v1402_v46 = vpop.f32.mrb[68].mxu0 }
 0x28c   : > { %v1403_v47 = vadd.f32 %v3322_v17, %v1402_v46  ;;  %v2433_v36 = vpop.f32.mrb[69].mxu0  ;;  %2464 = vmatmul.mubr.msk.bf16.gmra.mrb[64].mxu1 %vm1493_vm2, %v1449_v45 }
 0x28d   : > { %v1405_v48 = vpop.f32.mrb[70].mxu0  ;;  %2467 = vmatprep.mubr.msk.bf16.mxu1 %vm2891_vm0, %v2890_v43 }
 0x28e   : > { %v1406_v49 = vadd.f32 %v3322_v17, %v1405_v48  ;;  %v2434_v51 = vpop.f32.mrb[71].mxu0  ;;  %v1439_v37 = vmax.f32 %v1403_v47, 0.0 }
 0x290   : > { %v1440_v52 = vmax.f32 %v1406_v49, 0.0 }
 0x292   : > { %v1450_v54 = vpack.c.bf16 %v1440_v52, %v1439_v37 }
 0x293   : > { %v1410_v55 = vpop.f32.mrb[72].mxu0 }
 0x294   : > { %v1411_v40 = vadd.f32 %v3322_v17, %v1410_v55  ;;  %v2437_v57 = vpop.f32.mrb[73].mxu0  ;;  %2468 = vmatmul.mubr.msk.bf16.gmra.mrb[68].mxu1 %vm1493_vm2, %v1450_v54 }
 0x295   : > { %v1413_v58 = vpop.f32.mrb[74].mxu0  ;;  %2471 = vmatprep.mubr.msk.bf16.mxu1 %vm2891_vm0, %v2890_v43 }
 0x296   : > { %v1414_v60 = vadd.f32 %v3322_v17, %v1413_v58  ;;  %v2438_v50 = vpop.f32.mrb[75].mxu0  ;;  %v1441_v61 = vmax.f32 %v1411_v40, 0.0 }
 0x298   : > { %v1442_v62 = vmax.f32 %v1414_v60, 0.0 }
 0x29a   : > { %v1451_v63 = vpack.c.bf16 %v1442_v62, %v1441_v61 }
 0x29b   : > { %v1418_v53 = vpop.f32.mrb[76].mxu0 }
 0x29c   : > { %v1419_v0 = vadd.f32 %v3322_v17, %v1418_v53  ;;  %v2441_v1 = vpop.f32.mrb[77].mxu0  ;;  %2472 = vmatmul.mubr.msk.bf16.gmra.mrb[72].mxu1 %vm1493_vm2, %v1451_v63 }
 0x29d   : > { %v1421_v3 = vpop.f32.mrb[78].mxu0  ;;  %2475 = vmatprep.mubr.msk.bf16.mxu1 %vm2891_vm0, %v2890_v43 }
 0x29e   : > { %v1422_v4 = vadd.f32 %v3322_v17, %v1421_v3  ;;  %v2442_v56 = vpop.f32.mrb[79].mxu0  ;;  %v1443_v6 = vmax.f32 %v1419_v0, 0.0 }
 0x2a0   : > { %v1444_v7 = vmax.f32 %v1422_v4, 0.0 }
 0x2a2   : > { %v1452_v8 = vpack.c.bf16 %v1444_v7, %v1443_v6 }
 0x2a3   : > { %v1426_v59 = vpop.f32.mrb[80].mxu0 }
 0x2a4   : > { %v1427_v9 = vadd.f32 %v3322_v17, %v1426_v59  ;;  %v2445_v11 = vpop.f32.mrb[81].mxu0  ;;  %2476 = vmatmul.mubr.msk.bf16.gmra.mrb[76].mxu1 %vm1493_vm2, %v1452_v8 }
 0x2a5   : > { %v1429_v12 = vpop.f32.mrb[82].mxu0  ;;  %2479 = vmatprep.mubr.msk.bf16.mxu1 %vm2891_vm0, %v2890_v43 }
 0x2a6   : > { %v1430_v14 = vadd.f32 %v3322_v17, %v1429_v12  ;;  %v2446_v15 = vpop.f32.mrb[83].mxu0  ;;  %v1445_v2 = vmax.f32 %v1427_v9, 0.0 }
 0x2a8   : > { %v1446_v16 = vmax.f32 %v1430_v14, 0.0 }
 0x2aa   : > { %v1453_v10 = vpack.c.bf16 %v1446_v16, %v1445_v2 }
 0x2ac   : > { %2480 = vmatmul.mubr.msk.bf16.gmra.mrb[80].mxu1 %vm1493_vm2, %v1453_v10 }
 0x34f   : > { %v1549_v5 = vpop.f32.mrb[56].mxu1 }
 0x350   : > { %v3363_v13 = vadd.f32 %v3360_v19, %v1549_v5  ;;  %v2457_v21 = vpop.f32.mrb[57].mxu1 }
 0x351   : > { %v1552_v43 = vpop.f32.mrb[58].mxu1 }
 0x352   : > { %v3366_v17 = vadd.f32 %v3360_v19, %v1552_v43  ;;  %v2458_v23 = vpop.f32.mrb[59].mxu1  ;;  %v1605_v24 = vsel %vm1604_vm3, %v3363_v13, -inf }
 0x353   : > { %1606 = vmax.xlane.f32.xlu0 %v1605_v24 }
 0x354   : > { %v1608_v25 = vsel %vm1604_vm3, %v3366_v17, -inf }
 0x357   : > { %1609 = vmax.xlane.f32.xlu0 %v1608_v25  ;;  %v1557_v26 = vpop.f32.mrb[60].mxu1 }
 0x358   : > { %v3373_v20 = vadd.f32 %v3360_v19, %v1557_v26  ;;  %v2461_v27 = vpop.f32.mrb[61].mxu1 }
 0x359   : > { %v1560_v28 = vpop.f32.mrb[62].mxu1 }
 0x35a   : > { %v3376_v29 = vadd.f32 %v3360_v19, %v1560_v28  ;;  %v2462_v30 = vpop.f32.mrb[63].mxu1  ;;  %v1611_v31 = vsel %vm1604_vm3, %v3373_v20, -inf }
 0x35b   : > { %1612 = vmax.xlane.f32.xlu1 %v1611_v31 }
 0x35c   : > { %v1614_v32 = vsel %vm1604_vm3, %v3376_v29, -inf }
 0x35f   : > { %1615 = vmax.xlane.f32.xlu1 %v1614_v32  ;;  %v1565_v18 = vpop.f32.mrb[64].mxu1 }
 0x360   : > { %v3383_v34 = vadd.f32 %v3360_v19, %v1565_v18  ;;  %v2465_v35 = vpop.f32.mrb[65].mxu1 }
 0x361   : > { %v1568_v38 = vpop.f32.mrb[66].mxu1 }
 0x362   : > { %v3386_v22 = vadd.f32 %v3360_v19, %v1568_v38  ;;  %v2466_v39 = vpop.f32.mrb[67].mxu1  ;;  %v1617_v41 = vsel %vm1604_vm3, %v3383_v34, -inf }
 0x363   : > { %1618 = vmax.xlane.f32.xlu0 %v1617_v41 }
 0x364   : > { %v1620_v42 = vsel %vm1604_vm3, %v3386_v22, -inf }
 0x365   : > { %1621 = vmax.xlane.f32.xlu1 %v1620_v42 }
 0x367   : > { %v1573_v44 = vpop.f32.mrb[68].mxu1 }
 0x368   : > { %v3393_v33 = vadd.f32 %v3360_v19, %v1573_v44  ;;  %v2469_v45 = vpop.f32.mrb[69].mxu1 }
 0x369   : > { %v1576_v46 = vpop.f32.mrb[70].mxu1 }
 0x36a   : > { %v3396_v47 = vadd.f32 %v3360_v19, %v1576_v46  ;;  %v2470_v36 = vpop.f32.mrb[71].mxu1  ;;  %v1623_v48 = vsel %vm1604_vm3, %v3393_v33, -inf }
 0x36b   : > { %1624 = vmax.xlane.f32.xlu0 %v1623_v48 }
 0x36c   : > { %v1626_v49 = vsel %vm1604_vm3, %v3396_v47, -inf }
 0x36d   : > { %1627 = vmax.xlane.f32.xlu1 %v1626_v49 }
 0x36f   : > { %v1581_v51 = vpop.f32.mrb[72].mxu1 }
 0x370   : > { %v3403_v37 = vadd.f32 %v3360_v19, %v1581_v51  ;;  %v2473_v52 = vpop.f32.mrb[73].mxu1 }
 0x371   : > { %v1584_v54 = vpop.f32.mrb[74].mxu1 }
 0x372   : > { %v3406_v55 = vadd.f32 %v3360_v19, %v1584_v54  ;;  %v2474_v40 = vpop.f32.mrb[75].mxu1  ;;  %v1629_v57 = vsel %vm1604_vm3, %v3403_v37, -inf }
 0x373   : > { %1630 = vmax.xlane.f32.xlu0 %v1629_v57 }
 0x374   : > { %v1632_v58 = vsel %vm1604_vm3, %v3406_v55, -inf }
 0x375   : > { %1633 = vmax.xlane.f32.xlu1 %v1632_v58 }
 0x377   : > { %v1589_v60 = vpop.f32.mrb[76].mxu1 }
 0x378   : > { %v3413_v50 = vadd.f32 %v3360_v19, %v1589_v60  ;;  %v2477_v61 = vpop.f32.mrb[77].mxu1 }
 0x379   : > { %v1592_v62 = vpop.f32.mrb[78].mxu1 }
 0x37a   : > { %v3416_v63 = vadd.f32 %v3360_v19, %v1592_v62  ;;  %v2478_v53 = vpop.f32.mrb[79].mxu1  ;;  %v1635_v0 = vsel %vm1604_vm3, %v3413_v50, -inf }
 0x37b   : > { %1636 = vmax.xlane.f32.xlu0 %v1635_v0 }
 0x37c   : > { %v1638_v1 = vsel %vm1604_vm3, %v3416_v63, -inf }
 0x37d   : > { %1639 = vmax.xlane.f32.xlu1 %v1638_v1 }
 0x37f   : > { %v1597_v3 = vpop.f32.mrb[80].mxu1 }
 0x380   : > { %v3423_v4 = vadd.f32 %v3360_v19, %v1597_v3  ;;  %v2481_v56 = vpop.f32.mrb[81].mxu1 }
 0x381   : > { %v1600_v6 = vpop.f32.mrb[82].mxu1 }
 0x382   : > { %v3426_v7 = vadd.f32 %v3360_v19, %v1600_v6  ;;  %v2482_v8 = vpop.f32.mrb[83].mxu1  ;;  %v1641_v59 = vsel %vm1604_vm3, %v3423_v4, -inf }
 0x383   : > { %1642 = vmax.xlane.f32.xlu0 %v1641_v59 }
 0x384   : > { %v1644_v9 = vsel %vm1604_vm3, %v3426_v7, -inf }
 0x385   : > { %1645 = vmax.xlane.f32.xlu1 %v1644_v9 }
 0x3e0   : > { %v1607_v11 = vpop.xlane.xlu0 %1606 }
 0x3e1   : > { %v1647_v12 = vsub.f32 %v3363_v13, %v1607_v11 }
 0x3e3   : > { %v1661_v14 = vmul.f32 1.442695, %v1647_v12 }
 0x3e4   : > { %v1610_v15 = vpop.xlane.xlu0 %1609 }
 0x3e5   : > { %2664 = vpow2.f32 %v1661_v14  ;;  %v1648_v2 = vsub.f32 %v3366_v17, %v1610_v15 }
 0x3e7   : > { %v1663_v16 = vmul.f32 1.442695, %v1648_v2 }
 0x3e8   : > { %v1613_v10 = vpop.xlane.xlu1 %1612 }
 0x3e9   : > { %2666 = vpow2.f32 %v1663_v16  ;;  %v1649_v19 = vsub.f32 %v3373_v20, %v1613_v10 }
 0x3eb   : > { %v1665_v5 = vmul.f32 1.442695, %v1649_v19 }
 0x3ec   : > { %v1616_v21 = vpop.xlane.xlu1 %1615 }
 0x3ed   : > { %2668 = vpow2.f32 %v1665_v5  ;;  %v1650_v43 = vsub.f32 %v3376_v29, %v1616_v21 }
 0x3ef   : > { %v3436_v23 = vpop.eup %2664  ;;  %v1667_v24 = vmul.f32 1.442695, %v1650_v43 }
 0x3f0   : > { %v1619_v25 = vpop.xlane.xlu0 %1618  ;;  %v1689_v13 = vsel %vm1604_vm3, %v3436_v23, 0.0 }
 0x3f1   : > { %2670 = vpow2.f32 %v1667_v24  ;;  %v1651_v17 = vsub.f32 %v3383_v34, %v1619_v25  ;;  %1690 = vadd.xlane.f32.xlu0 %v1689_v13 }
 0x3f2   : > { %v1622_v26 = vpop.xlane.xlu1 %1621 }
 0x3f3   : > { %v3441_v27 = vpop.eup %2666  ;;  %v1669_v20 = vmul.f32 1.442695, %v1651_v17  ;;  %v1652_v28 = vsub.f32 %v3386_v22, %v1622_v26 }
 0x3f4   : > { %v1692_v29 = vsel %vm1604_vm3, %v3441_v27, 0.0 }
 0x3f5   : > { %2672 = vpow2.f32 %v1669_v20  ;;  %v1671_v30 = vmul.f32 1.442695, %v1652_v28  ;;  %1693 = vadd.xlane.f32.xlu1 %v1692_v29 }
 0x3f7   : > { %v3446_v31 = vpop.eup %2668  ;;  %2674 = vpow2.f32 %v1671_v30 }
 0x3f8   : > { %v1625_v32 = vpop.xlane.xlu0 %1624  ;;  %v1695_v18 = vsel %vm1604_vm3, %v3446_v31, 0.0 }
 0x3f9   : > { %v1653_v34 = vsub.f32 %v3393_v33, %v1625_v32  ;;  %1696 = vadd.xlane.f32.xlu0 %v1695_v18 }
 0x3fa   : > { %v1628_v35 = vpop.xlane.xlu1 %1627 }
 0x3fb   : > { %v3451_v38 = vpop.eup %2670  ;;  %v1673_v22 = vmul.f32 1.442695, %v1653_v34  ;;  %v1654_v39 = vsub.f32 %v3396_v47, %v1628_v35 }
 0x3fc   : > { %v1698_v41 = vsel %vm1604_vm3, %v3451_v38, 0.0 }
 0x3fd   : > { %2676 = vpow2.f32 %v1673_v22  ;;  %v1675_v42 = vmul.f32 1.442695, %v1654_v39  ;;  %1699 = vadd.xlane.f32.xlu1 %v1698_v41 }
 0x3ff   : > { %v3456_v44 = vpop.eup %2672  ;;  %2678 = vpow2.f32 %v1675_v42 }
 0x400   : > { %v1631_v45 = vpop.xlane.xlu0 %1630  ;;  %v1701_v33 = vsel %vm1604_vm3, %v3456_v44, 0.0 }
 0x401   : > { %v3460_v46 = vpop.eup %2674  ;;  %v1655_v36 = vsub.f32 %v3403_v37, %v1631_v45  ;;  %1702 = vadd.xlane.f32.xlu0 %v1701_v33 }
 0x402   : > { %v1634_v48 = vpop.xlane.xlu1 %1633  ;;  %v1704_v47 = vsel %vm1604_vm3, %v3460_v46, 0.0 }
 0x403   : > { %v1677_v49 = vmul.f32 1.442695, %v1655_v36  ;;  %v1656_v51 = vsub.f32 %v3406_v55, %v1634_v48  ;;  %1705 = vadd.xlane.f32.xlu1 %v1704_v47 }
 0x405   : > { %2680 = vpow2.f32 %v1677_v49  ;;  %v1679_v52 = vmul.f32 1.442695, %v1656_v51 }
 0x407   : > { %v3466_v54 = vpop.eup %2676  ;;  %2682 = vpow2.f32 %v1679_v52 }
 0x408   : > { %v1637_v40 = vpop.xlane.xlu0 %1636  ;;  %v1707_v57 = vsel %vm1604_vm3, %v3466_v54, 0.0 }
 0x409   : > { %v3470_v58 = vpop.eup %2678  ;;  %v1657_v37 = vsub.f32 %v3413_v50, %v1637_v40  ;;  %1708 = vadd.xlane.f32.xlu0 %v1707_v57 }
 0x40a   : > { %v1640_v60 = vpop.xlane.xlu1 %1639  ;;  %v1710_v61 = vsel %vm1604_vm3, %v3470_v58, 0.0 }
 0x40b   : > { %v1681_v55 = vmul.f32 1.442695, %v1657_v37  ;;  %v1658_v62 = vsub.f32 %v3416_v63, %v1640_v60  ;;  %1711 = vadd.xlane.f32.xlu1 %v1710_v61 }
 0x40d   : > { %2684 = vpow2.f32 %v1681_v55  ;;  %v1683_v53 = vmul.f32 1.442695, %v1658_v62 }
 0x40f   : > { %v3476_v0 = vpop.eup %2680  ;;  %2686 = vpow2.f32 %v1683_v53 }
 0x410   : > { %v1643_v1 = vpop.xlane.xlu0 %1642  ;;  %v1713_v3 = vsel %vm1604_vm3, %v3476_v0, 0.0 }
 0x411   : > { %v3480_v56 = vpop.eup %2682  ;;  %v1659_v50 = vsub.f32 %v3423_v4, %v1643_v1  ;;  %1714 = vadd.xlane.f32.xlu0 %v1713_v3 }
 0x412   : > { %v1646_v6 = vpop.xlane.xlu1 %1645  ;;  %v1716_v8 = vsel %vm1604_vm3, %v3480_v56, 0.0 }
 0x413   : > { %v1685_v63 = vmul.f32 1.442695, %v1659_v50  ;;  %v1660_v59 = vsub.f32 %v3426_v7, %v1646_v6  ;;  %1717 = vadd.xlane.f32.xlu1 %v1716_v8 }
 0x415   : > { %2688 = vpow2.f32 %v1685_v63  ;;  %v1687_v9 = vmul.f32 1.442695, %v1660_v59 }
 0x417   : > { %v3486_v11 = vpop.eup %2684  ;;  %2690 = vpow2.f32 %v1687_v9 }
 0x418   : > { %v1719_v12 = vsel %vm1604_vm3, %v3486_v11, 0.0 }
 0x419   : > { %v3490_v14 = vpop.eup %2686  ;;  %1720 = vadd.xlane.f32.xlu0 %v1719_v12 }
 0x41a   : > { %v1722_v4 = vsel %vm1604_vm3, %v3490_v14, 0.0 }
 0x41b   : > { %1723 = vadd.xlane.f32.xlu1 %v1722_v4 }
 0x41f   : > { %v3494_v15 = vpop.eup %2688 }
 0x420   : > { %v1725_v7 = vsel %vm1604_vm3, %v3494_v15, 0.0 }
 0x421   : > { %v3498_v2 = vpop.eup %2690  ;;  %1726 = vadd.xlane.f32.xlu0 %v1725_v7 }
 0x422   : > { %v1728_v16 = vsel %vm1604_vm3, %v3498_v2, 0.0 }
 0x423   : > { %1729 = vadd.xlane.f32.xlu1 %v1728_v16 }
 0x47e   : > { %v1691_v10 = vpop.xlane.xlu0 %1690 }
 0x47f   : > { %2692 = vrcp.f32 %v1691_v10 }
 0x482   : > { %v1694_v19 = vpop.xlane.xlu1 %1693 }
 0x483   : > { %2694 = vrcp.f32 %v1694_v19 }
 0x486   : > { %v1697_v5 = vpop.xlane.xlu0 %1696 }
 0x487   : > { %2696 = vrcp.f32 %v1697_v5 }
 0x489   : > { %v2693_v21 = vpop.eup %2692 }
 0x48a   : > { %v1732_v43 = vmul.f32 %v2693_v21, %v3436_v23  ;;  %v1700_v24 = vpop.xlane.xlu1 %1699 }
 0x48b   : > { %2698 = vrcp.f32 %v1700_v24 }
 0x48c   : > { %1759 = vst.msk [vmem:[%s3504_s20] sm:$0xff] %vm1604_vm3, %v1732_v43 }
 0x48d   : > { %v2695_v25 = vpop.eup %2694 }
 0x48e   : > { %v1734_v13 = vmul.f32 %v2695_v25, %v3441_v27  ;;  %v1703_v17 = vpop.xlane.xlu0 %1702 }
 0x48f   : > { %2700 = vrcp.f32 %v1703_v17 }
 0x490   : > { %1760 = vst.msk [vmem:[%s3504_s20 + $0x8] sm:$0xff] %vm1604_vm3, %v1734_v13  ;;  %v1706_v26 = vpop.xlane.xlu1 %1705 }
 0x491   : > { %v2697_v23 = vpop.eup %2696  ;;  %2702 = vrcp.f32 %v1706_v26 }
 0x492   : > { %v1736_v20 = vmul.f32 %v2697_v23, %v3446_v31 }
 0x494   : > { %1761 = vst.msk [vmem:[%s3504_s20 + $0x10] sm:$0xff] %vm1604_vm3, %v1736_v20 }
 0x495   : > { %v2699_v28 = vpop.eup %2698 }
 0x496   : > { %v1738_v29 = vmul.f32 %v2699_v28, %v3451_v38  ;;  %v1709_v30 = vpop.xlane.xlu0 %1708 }
 0x497   : > { %2704 = vrcp.f32 %v1709_v30 }
 0x498   : > { %1762 = vst.msk [vmem:[%s3504_s20 + $0x18] sm:$0xff] %vm1604_vm3, %v1738_v29  ;;  %v1712_v27 = vpop.xlane.xlu1 %1711 }
 0x499   : > { %v2701_v32 = vpop.eup %2700  ;;  %2706 = vrcp.f32 %v1712_v27 }
 0x49a   : > { %v1740_v18 = vmul.f32 %v2701_v32, %v3456_v44 }
 0x49b   : > { %v2703_v34 = vpop.eup %2702 }
 0x49c   : > { %1763 = vst.msk [vmem:[%s3504_s20 + $0x20] sm:$0xff] %vm1604_vm3, %v1740_v18  ;;  %v1742_v31 = vmul.f32 %v2703_v34, %v3460_v46 }
 0x49e   : > { %1764 = vst.msk [vmem:[%s3504_s20 + $0x28] sm:$0xff] %vm1604_vm3, %v1742_v31  ;;  %v1715_v35 = vpop.xlane.xlu0 %1714 }
 0x49f   : > { %2708 = vrcp.f32 %v1715_v35 }
 0x4a0   : > { %v1718_v38 = vpop.xlane.xlu1 %1717 }
 0x4a1   : > { %v2705_v22 = vpop.eup %2704  ;;  %2710 = vrcp.f32 %v1718_v38 }
 0x4a2   : > { %v1744_v39 = vmul.f32 %v2705_v22, %v3466_v54 }
 0x4a3   : > { %v2707_v41 = vpop.eup %2706 }
 0x4a4   : > { %1765 = vst.msk [vmem:[%s3504_s20 + $0x30] sm:$0xff] %vm1604_vm3, %v1744_v39  ;;  %v1746_v42 = vmul.f32 %v2707_v41, %v3470_v58 }
 0x4a6   : > { %1766 = vst.msk [vmem:[%s3504_s20 + $0x38] sm:$0xff] %vm1604_vm3, %v1746_v42  ;;  %v1721_v44 = vpop.xlane.xlu0 %1720 }
 0x4a7   : > { %2712 = vrcp.f32 %v1721_v44 }
 0x4a8   : > { %v1724_v45 = vpop.xlane.xlu1 %1723 }
 0x4a9   : > { %v2709_v33 = vpop.eup %2708  ;;  %2714 = vrcp.f32 %v1724_v45 }
 0x4aa   : > { %v1748_v46 = vmul.f32 %v2709_v33, %v3476_v0 }
 0x4ab   : > { %v2711_v36 = vpop.eup %2710 }
 0x4ac   : > { %1767 = vst.msk [vmem:[%s3504_s20 + $0x40] sm:$0xff] %vm1604_vm3, %v1748_v46  ;;  %v1750_v48 = vmul.f32 %v2711_v36, %v3480_v56 }
 0x4ae   : > { %1768 = vst.msk [vmem:[%s3504_s20 + $0x48] sm:$0xff] %vm1604_vm3, %v1750_v48  ;;  %v1727_v47 = vpop.xlane.xlu0 %1726 }
 0x4af   : > { %2716 = vrcp.f32 %v1727_v47 }
 0x4b0   : > { %v1730_v49 = vpop.xlane.xlu1 %1729 }
 0x4b1   : > { %v2713_v51 = vpop.eup %2712  ;;  %2718 = vrcp.f32 %v1730_v49 }
 0x4b2   : > { %v1752_v52 = vmul.f32 %v2713_v51, %v3486_v11 }
 0x4b3   : > { %v2715_v54 = vpop.eup %2714 }
 0x4b4   : > { %1769 = vst.msk [vmem:[%s3504_s20 + $0x50] sm:$0xff] %vm1604_vm3, %v1752_v52  ;;  %v1754_v40 = vmul.f32 %v2715_v54, %v3490_v14 }
 0x4b6   : > { %1770 = vst.msk [vmem:[%s3504_s20 + $0x58] sm:$0xff] %vm1604_vm3, %v1754_v40 }
 0x4b8   : > { %1779 = sbr.rel (!%p3662_p6) target bundleno = 1276 (0x4fc), region = 60 }
 0x4b9   : > { %v2717_v57 = vpop.eup %2716 }
 0x4ba   : > { %v1756_v58 = vmul.f32 %v2717_v57, %v3494_v15 }
 0x4bb   : > { %v2719_v37 = vpop.eup %2718 }
 0x4bc   : > { %1771 = vst.msk [vmem:[%s3504_s20 + $0x60] sm:$0xff] %vm1604_vm3, %v1756_v58  ;;  %v1758_v60 = vmul.f32 %v2719_v37, %v3498_v2 }
 0x4be   : > { %1772 = vst.msk [vmem:[%s3504_s20 + $0x68] sm:$0xff] %vm1604_vm3, %v1758_v60 }
 0x4bf   : > { %s3673_s13 = smov (!%p1782_p7, %s1781_s13), 14 }
 0x4c0   : > { %s2152_s14 = sshll.u32 %s3673_s13, 7 }
 0x4c1   : > { %p2155_p9 = scmp.eq.s32.totalorder %s2152_s14, 0 }
 0x4c2   : > { %2720 = sdivrem.u32 (!%p2155_p9), %s3673_s13, 14 }
 0x4c3   : > { %1790 = sbr.rel (%p2155_p9) target bundleno = 1276 (0x4fc), region = 64 }
 0x4cb   : > { %s3560_s12 = spop.drf %2720 }
 0x4cc   : > { %p2156_p12 = scmp.le.s32.totalorder %s3560_s12, 0 }
 0x4cd   : > { %s3663_s28 = smov (!%p2156_p12), %s3554_s24  ;;  %s3664_s21 = smov (!%p2156_p12), %s3504_s20 }
 0x4ce   : > { %2007 = sbr.rel (%p2156_p12) target bundleno = 1247 (0x4df), region = 146  ;;  %s3569_s16 = smov (!%p2156_p12), 0  }
 0x4cf   : > { %s3571_s15 = smov (!%p2156_p12), 0  }
 0x4d5 LB: >> { %v1880_v61 = vld [vmem:[%s2858_s21] sm:$0xff]  ;;  %v1882_v55 = vld [vmem:[%s2858_s21 + $0x8] sm:$0xff]  ;;  %v1884_v62 = vld [vmem:[%s2858_s21 + $0x10] sm:$0xff]  ;;  %s1908_s10 = sadd.s32 1, %s2862_s16  ;;  %s1874_s15 = sadd.s32 1, %s2866_s15   ;;  %s2866_s15 = sphi %s3571_s15, %s1874_s15   ;;  %s2862_s16 = sphi %s3569_s16, %s3665_s16   ;;  %s2858_s21 = sphi %s3664_s21, %s1913_s21   ;;  %s2854_s28 = sphi %s3663_s28, %s1914_s28  }
 0x4d6   : >> { %1881 = vst [vmem:[%s2854_s28] sm:$0xff] %v1880_v61  ;;  %1883 = vst [vmem:[%s2854_s28 + $0x8] sm:$0xff] %v1882_v55  ;;  %v1886_v53 = vld [vmem:[%s2858_s21 + $0x18] sm:$0xff]  ;;  %v1888_v0 = vld [vmem:[%s2858_s21 + $0x20] sm:$0xff]  ;;  %p1909_p0 = scmp.ge.s32.totalorder %s1908_s10, %s3560_s12  ;;  %p1873_p2 = scmp.ge.s32.totalorder %s1874_s15, %s3560_s12 }
 0x4d7   : >> { %1885 = vst [vmem:[%s2854_s28 + $0x10] sm:$0xff] %v1884_v62  ;;  %v1890_v1 = vld [vmem:[%s2858_s21 + $0x28] sm:$0xff]  ;;  %1887 = vst [vmem:[%s2854_s28 + $0x18] sm:$0xff] %v1886_v53  ;;  %v1892_v3 = vld [vmem:[%s2858_s21 + $0x30] sm:$0xff] }
 0x4d8   : >> { %1889 = vst [vmem:[%s2854_s28 + $0x20] sm:$0xff] %v1888_v0  ;;  %1891 = vst [vmem:[%s2854_s28 + $0x28] sm:$0xff] %v1890_v1  ;;  %v1894_v56 = vld [vmem:[%s2858_s21 + $0x38] sm:$0xff]  ;;  %v1896_v50 = vld [vmem:[%s2858_s21 + $0x40] sm:$0xff]  ;;  %s3675_s10 = smov (%p1909_p0, %s1908_s10), 0  ;;  %1876 = sbr.rel (!%p1873_p2) target bundleno = 1237 (0x4d5), region = 152 }
 0x4d9   : >> { %1893 = vst [vmem:[%s2854_s28 + $0x30] sm:$0xff] %v1892_v3  ;;  %1895 = vst [vmem:[%s2854_s28 + $0x38] sm:$0xff] %v1894_v56  ;;  %v1898_v6 = vld [vmem:[%s2858_s21 + $0x48] sm:$0xff]  ;;  %v1900_v8 = vld [vmem:[%s2858_s21 + $0x50] sm:$0xff]  ;;  %s1911_s30 = smul.u32 112, %s3675_s10  ;;  %s3665_s16 = smov %s3675_s10 }
 0x4da   : >> { %1897 = vst [vmem:[%s2854_s28 + $0x40] sm:$0xff] %v1896_v50  ;;  %v1902_v63 = vld [vmem:[%s2858_s21 + $0x58] sm:$0xff]  ;;  %1899 = vst [vmem:[%s2854_s28 + $0x48] sm:$0xff] %v1898_v6  ;;  %v1904_v59 = vld [vmem:[%s2858_s21 + $0x60] sm:$0xff] }
 0x4db   : >> { %1901 = vst [vmem:[%s2854_s28 + $0x50] sm:$0xff] %v1900_v8  ;;  %1903 = vst [vmem:[%s2854_s28 + $0x58] sm:$0xff] %v1902_v63  ;;  %v1906_v9 = vld [vmem:[%s2858_s21 + $0x68] sm:$0xff]  ;;  %s1913_s21 = scalar_lea.vmem %s3504_s20, %s1911_s30 [#allocation6]  }
 0x4dc   : >> { %1905 = vst [vmem:[%s2854_s28 + $0x60] sm:$0xff] %v1904_v59  ;;  %1907 = vst [vmem:[%s2854_s28 + $0x68] sm:$0xff] %v1906_v9  ;;  %s1914_s28 = scalar_lea.vmem %s3554_s24, %s1911_s30  }
 0x4df PF: > { %2722 = sdivrem.u32 %s3673_s13, 14 }
 0x4e0   : > { %s2157_s8 = smul.u32 112, %s3560_s12 }
 0x4e2   : > { %s1919_s17 = scalar_lea.vmem %s3504_s20, %s2157_s8 [#allocation6]   ;;  %s1921_s19 = scalar_lea.vmem %s3554_s24, %s2157_s8  }
 0x4e8   : > { %s2723_s27 = spop.drf %2722 }
 0x4e9   : > { %p2159_p4 = scmp.le.s32.totalorder %s2723_s27, 0 }
 0x4ea   : > { %s2868_s18 = smov (!%p2159_p4), %s1921_s19   ;;  %s2872_s11 = smov (!%p2159_p4), %s1919_s17  }
 0x4eb   : > { %2021 = sbr.rel (%p2159_p4) target bundleno = 1276 (0x4fc), region = 157  ;;  %s2876_s22 = smov (!%p2159_p4), 0  }
 0x4ec   : > { %s2880_s23 = smov (!%p2159_p4), 0  }
 0x4f2 LB: >> { %v1931_v11 = vld [vmem:[%s2874_s11] sm:$0xff]  ;;  %s1933_s14 = sadd.s32 1, %s2878_s22  ;;  %s1925_s23 = sadd.s32 1, %s2882_s23   ;;  %s2882_s23 = sphi %s2880_s23, %s1925_s23   ;;  %s2878_s22 = sphi %s2876_s22, %s2877_s22   ;;  %s2874_s11 = sphi %s2872_s11, %s1938_s11   ;;  %s2870_s18 = sphi %s2868_s18, %s1939_s18  }
 0x4f3   : >> { %1932 = vst [vmem:[%s2870_s18] sm:$0xff] %v1931_v11  ;;  %p1934_p8 = scmp.ge.s32.totalorder %s1933_s14, %s2723_s27  ;;  %p1924_p10 = scmp.ge.s32.totalorder %s1925_s23, %s2723_s27 }
 0x4f5   : >> { %s3677_s14 = smov (%p1934_p8, %s1933_s14), 0  ;;  %1927 = sbr.rel (!%p1924_p10) target bundleno = 1266 (0x4f2), region = 163 }
 0x4f6   : >> { %s2160_s20 = sshll.u32 %s3677_s14, 3  ;;  %s2877_s22 = smov %s3677_s14  }
 0x4f7   : >> { %s1938_s11 = scalar_lea.vmem %s1919_s17, %s2160_s20 [#allocation6]   ;;  %s1939_s18 = scalar_lea.vmem %s1921_s19, %s2160_s20  }
 0x4fc PF: > { %p18_p13 = scmp.ge.s32.totalorder %s2954_s29, 4   ;;  %s3666_s24 = smov %s2842_s25 }
 0x4fd   : > { %s3667_s25 = smov %s2846_s26  ;;  %s3668_s26 = smov %s2964_s9 }
 0x4fe   : > { %s3669_s27 = smov %s2954_s29  ;;  %20 = sbr.rel (!%p18_p13) target bundleno = 4 (0x4), region = 174 }
 0x505   :  { %1955 = vsyncpa [#allocation3], 1 }
 0x506   :  { %1957 = vsyncpa [#allocation3 + $0x1], 1 }
 0x507   :  { %1958 = vsyncpa [#allocation5], 1 }

</bundles_post_ra>
